<compile_context>
chip_gen: v7x
topology: tpu7x:2x2x1
jax: 0.10.0
libtpu: 0.0.40
codegen_flags: <defaults>
</compile_context>

<pallas_src>
import functools

import jax
import jax.numpy as jnp
from jax.experimental import pallas as pl
from jax.experimental.pallas import tpu as pltpu

_NEG_BIG = -1e30


def _round_up(x, m):
    return ((x + m - 1) // m) * m


def _mha_kernel(kT_ref, v_ref, q_ref, addmask_ref, outmask_ref, wo_ref, bo_ref,
                out_ref, m_sc, l_sc, acc_sc, *, heads):
    """Grid step = (batch b, query tile t, key tile s). s is the reduction axis."""
    s_idx = pl.program_id(2)
    num_s = pl.num_programs(2)

    @pl.when(s_idx == 0)
    def _init():
        m_sc[...] = jnp.full(m_sc.shape, _NEG_BIG, dtype=m_sc.dtype)
        l_sc[...] = jnp.zeros(l_sc.shape, dtype=l_sc.dtype)
        acc_sc[...] = jnp.zeros(acc_sc.shape, dtype=acc_sc.dtype)

    # Additive key mask for this key tile: 0 where valid, -1e30 where padding.
    # Shape [bs, 1] -> broadcasts over the lane (query) axis of the scores.
    addmask = addmask_ref[0]                                    # [bs, 1] f32

    # Per-head online-softmax update; heads is small & static -> unrolled,
    # every per-head access is a free leading-dim Ref index.
    for h in range(heads):
        k_h = kT_ref[0, h]                                      # [bs, ch] bf16
        q_h = q_ref[0, h]                                       # [ch, bt] bf16 (pre-scaled)
        v_h = v_ref[0, h]                                       # [ch, bs] bf16

        # score[s, t] for this head/tile: canonical [bs,ch]@[ch,bt] on the MXU.
        s_h = jnp.dot(k_h, q_h, preferred_element_type=jnp.float32)   # [bs, bt]
        s_h = s_h + addmask

        m_prev = m_sc[h]                                        # [1, bt]
        m_new = jnp.maximum(m_prev, jnp.max(s_h, axis=0, keepdims=True))
        alpha = jnp.exp(m_prev - m_new)                         # [1, bt]
        p = jnp.exp(s_h - m_new)                                # [bs, bt] f32
        l_sc[h] = alpha * l_sc[h] + jnp.sum(p, axis=0, keepdims=True)

        # ctx[c, t] = sum_s v[c, s] * p[s, t]  -> lane-dense [ch, bt].
        ctx = jnp.dot(v_h, p.astype(jnp.bfloat16),
                      preferred_element_type=jnp.float32)       # [ch, bt]
        acc_sc[h] = alpha * acc_sc[h] + ctx
        m_sc[h] = m_new

    @pl.when(s_idx == num_s - 1)
    def _finalize():
        inv_l = pl.reciprocal(l_sc[...], approx=True)           # (heads, 1, bt)
        ctx = (acc_sc[...] * inv_l).astype(jnp.bfloat16)        # (heads, ch, bt)
        hidden = wo_ref.shape[1]
        bt = ctx.shape[-1]
        ctx_all = ctx.reshape(hidden, bt)                       # [H, bt]
        # Single fused output projection: [O,H] @ [H,bt] -> lands in out layout.
        out = jnp.dot(wo_ref[...], ctx_all,
                      preferred_element_type=jnp.float32) + bo_ref[...]  # [O, bt]
        out_ref[0] = (out * outmask_ref[0]).astype(out_ref.dtype)


def multihead_attention(keys, values, queries, mask, params, *, heads,
                        block_s=1024, block_t=512):
    """keys:[B,Kc,S] values:[B,Vc,S] queries:[B,Qc,T] mask:[B,S,T] or None."""
    wk, bk, wv, bv, wq, bq, wo, bo = params
    B, Kc, S = keys.shape
    _, Vc, _ = values.shape
    _, Qc, T = queries.shape
    H = wk.shape[0]
    O = wo.shape[0]
    ch = H // heads
    scale = ch ** (-0.5)

    # Tile sizes: 128-multiples (defaults are 256-multiples for v6e/v7x MXU),
    # capped by the padded sequence lengths.
    bs = min(_round_up(block_s, 128), _round_up(S, 128))
    bt = min(_round_up(block_t, 128), _round_up(T, 128))
    s_pad = _round_up(S, bs)
    t_pad = _round_up(T, bt)

    def _pad_last(x, target):
        pad = target - x.shape[-1]
        if pad == 0:
            return x
        cfg = [(0, 0)] * (x.ndim - 1) + [(0, pad)]
        return jnp.pad(x, cfg)

    keys_p = _pad_last(keys.astype(jnp.float32), s_pad)
    values_p = _pad_last(values.astype(jnp.float32), s_pad)
    queries_p = _pad_last(queries.astype(jnp.float32), t_pad)

    # Grid-invariant 1x1-conv projections hoisted out of the kernel
    # (tiny channel contractions; done once instead of once per grid step).
    k_proj = (jnp.einsum('oi,bis->bos', wk, keys_p) + bk[None]
              ).reshape(B, heads, ch, s_pad)
    v_proj = (jnp.einsum('oi,bis->bos', wv, values_p) + bv[None]
              ).reshape(B, heads, ch, s_pad)
    q_proj = ((jnp.einsum('oi,bit->bot', wq, queries_p) + bq[None]) * scale
              ).reshape(B, heads, ch, t_pad)

    kT = jnp.transpose(k_proj, (0, 1, 3, 2)).astype(jnp.bfloat16)   # [B,h,S_pad,ch]
    vP = v_proj.astype(jnp.bfloat16)                                # [B,h,ch,S_pad]
    qP = q_proj.astype(jnp.bfloat16)                                # [B,h,ch,T_pad]

    # Only two mask vectors are ever used by the reference:
    #   key mask = mask[:, :, 0] (scores), out mask = mask[:, 0, :] (output).
    if mask is None:
        key_valid = jnp.ones((B, S), jnp.float32)
        out_mask = jnp.ones((B, T), jnp.float32)
    else:
        mask_f = mask.astype(jnp.float32)
        key_valid = mask_f[:, :, 0]
        out_mask = mask_f[:, 0, :]
    key_valid = _pad_last(key_valid, s_pad)     # padded keys -> 0 -> masked
    out_mask = _pad_last(out_mask, t_pad)       # padded queries -> zeroed
    add_mask = jnp.where(key_valid != 0, 0.0, _NEG_BIG).reshape(B, s_pad, 1)
    out_mask = out_mask.reshape(B, 1, t_pad)

    wo_b = wo.astype(jnp.bfloat16)

    kernel = functools.partial(_mha_kernel, heads=heads)

    out_p = pl.pallas_call(
        kernel,
        out_shape=jax.ShapeDtypeStruct((B, O, t_pad), jnp.float32),
        grid_spec=pltpu.PrefetchScalarGridSpec(
            num_scalar_prefetch=0,
            grid=(B, t_pad // bt, s_pad // bs),
            in_specs=[
                pl.BlockSpec((1, heads, bs, ch), lambda b, t, s: (b, 0, s, 0)),
                pl.BlockSpec((1, heads, ch, bs), lambda b, t, s: (b, 0, 0, s)),
                pl.BlockSpec((1, heads, ch, bt), lambda b, t, s: (b, 0, 0, t)),
                pl.BlockSpec((1, bs, 1), lambda b, t, s: (b, s, 0)),
                pl.BlockSpec((1, 1, bt), lambda b, t, s: (b, 0, t)),
                pl.BlockSpec(wo_b.shape, lambda b, t, s: (0, 0)),
                pl.BlockSpec(bo.shape, lambda b, t, s: (0, 0)),
            ],
            out_specs=pl.BlockSpec((1, O, bt), lambda b, t, s: (b, 0, t)),
            scratch_shapes=[
                pltpu.VMEM((heads, 1, bt), jnp.float32),      # running max
                pltpu.VMEM((heads, 1, bt), jnp.float32),      # running denom
                pltpu.VMEM((heads, ch, bt), jnp.float32),     # context acc
            ],
        ),
        compiler_params=pltpu.CompilerParams(
            dimension_semantics=("parallel", "parallel", "arbitrary"),
            vmem_limit_bytes=48 * 1024 * 1024),
    )(kT, vP, qP, add_mask, out_mask, wo_b, bo)

    return out_p[:, :, :T]


def reference(keys, values, queries, mask, params, *, heads):
    """Plain-JAX f32 reference mirroring the PyTorch forward exactly."""
    wk, bk, wv, bv, wq, bq, wo, bo = params
    B, _, S = keys.shape
    T = queries.shape[-1]
    H = wk.shape[0]
    ch = H // heads
    k = jnp.einsum('oi,bis->bos', wk, keys) + bk[None]
    v = jnp.einsum('oi,bis->bos', wv, values) + bv[None]
    q = jnp.einsum('oi,bit->bot', wq, queries) + bq[None]
    k = k.reshape(B, heads, ch, S)
    v = v.reshape(B, heads, ch, S)
    q = q.reshape(B, heads, ch, T)
    score = jnp.einsum('bhcs,bhct->bhst', k, q) * ch ** (-0.5)
    if mask is not None:
        score = jnp.where(mask[:, None, :, 0:1] != 0, score, -jnp.inf)
    w = jax.nn.softmax(score, axis=2)
    ctx = jnp.einsum('bhcs,bhst->bhct', v, w).reshape(B, H, T)
    out = jnp.einsum('oi,bit->bot', wo, ctx) + bo[None]
    if mask is not None:
        out = out * mask[:, 0:1, :]
    return out


def _make_mask(key_lens, query_lens, S, T):
    kvalid = (jnp.arange(S)[None, :] < key_lens[:, None]).astype(jnp.float32)
    qvalid = (jnp.arange(T)[None, :] < query_lens[:, None]).astype(jnp.float32)
    return kvalid[:, :, None] * qvalid[:, None, :]


if __name__ == "__main__":
    # Module hyper-parameters (small, consistent with the PyTorch __init__).
    KEYS_CH, VALUES_CH, QUERIES_CH = 6, 5, 7
    OUT_CH, HIDDEN_CH, HEADS = 16, 32, 4

    root = jax.random.PRNGKey(0)
    ks = jax.random.split(root, 16)

    scale = 0.1
    wk = scale * jax.random.normal(ks[0], (HIDDEN_CH, KEYS_CH), jnp.float32)
    bk = scale * jax.random.normal(ks[1], (HIDDEN_CH, 1), jnp.float32)
    wv = scale * jax.random.normal(ks[2], (HIDDEN_CH, VALUES_CH), jnp.float32)
    bv = scale * jax.random.normal(ks[3], (HIDDEN_CH, 1), jnp.float32)
    wq = scale * jax.random.normal(ks[4], (HIDDEN_CH, QUERIES_CH), jnp.float32)
    bq = scale * jax.random.normal(ks[5], (HIDDEN_CH, 1), jnp.float32)
    wo = scale * jax.random.normal(ks[6], (OUT_CH, HIDDEN_CH), jnp.float32)
    bo = scale * jax.random.normal(ks[7], (OUT_CH, 1), jnp.float32)
    params = (wk, bk, wv, bv, wq, bq, wo, bo)

    # --- case 1: tiny shapes (single key/query tile) -------------------------
    B, S, T = 2, 12, 8
    keys = jax.random.normal(ks[8], (B, KEYS_CH, S), jnp.float32)
    values = jax.random.normal(ks[9], (B, VALUES_CH, S), jnp.float32)
    queries = jax.random.normal(ks[10], (B, QUERIES_CH, T), jnp.float32)
    mask = _make_mask(jnp.array([S, 9]), jnp.array([T, 6]), S, T)

    out = multihead_attention(keys, values, queries, mask, params, heads=HEADS)
    out = jax.block_until_ready(out)
    ref = reference(keys, values, queries, mask, params, heads=HEADS)
    assert out.shape == (B, OUT_CH, T)
    assert jnp.allclose(out, ref, atol=1e-2, rtol=1e-2), (
        f"case1 mismatch, max|diff|={jnp.max(jnp.abs(out - ref))}")

    # --- case 2: multiple key/query tiles (exercises online softmax) ---------
    B, S, T = 2, 150, 140
    keys2 = jax.random.normal(ks[11], (B, KEYS_CH, S), jnp.float32)
    values2 = jax.random.normal(ks[12], (B, VALUES_CH, S), jnp.float32)
    queries2 = jax.random.normal(ks[13], (B, QUERIES_CH, T), jnp.float32)
    mask2 = _make_mask(jnp.array([S, 100]), jnp.array([T, 90]), S, T)

    out2 = multihead_attention(keys2, values2, queries2, mask2, params,
                               heads=HEADS, block_s=128, block_t=128)
    out2 = jax.block_until_ready(out2)
    ref2 = reference(keys2, values2, queries2, mask2, params, heads=HEADS)
    assert out2.shape == (B, OUT_CH, T)
    assert jnp.allclose(out2, ref2, atol=1e-2, rtol=1e-2), (
        f"case2 mismatch, max|diff|={jnp.max(jnp.abs(out2 - ref2))}")

    # --- case 3: no mask ------------------------------------------------------
    out3 = multihead_attention(keys2, values2, queries2, None, params,
                               heads=HEADS, block_s=128, block_t=128)
    out3 = jax.block_until_ready(out3)
    ref3 = reference(keys2, values2, queries2, None, params, heads=HEADS)
    assert jnp.allclose(out3, ref3, atol=1e-2, rtol=1e-2), (
        f"case3 mismatch, max|diff|={jnp.max(jnp.abs(out3 - ref3))}")

    print("KERNEL_OK")
</pallas_src>

<mosaic_0001>
module attributes {stable_mosaic.version = 11 : i64} {
  func.func @_mha_kernel(%arg0: i32, %arg1: i32, %arg2: i32, %arg3: memref<1x4x128x8xbf16, #tpu.memory_space<vmem>>, %arg4: memref<1x4x8x128xbf16, #tpu.memory_space<vmem>>, %arg5: memref<1x4x8x128xbf16, #tpu.memory_space<vmem>>, %arg6: memref<1x128x1xf32, #tpu.memory_space<vmem>>, %arg7: memref<1x1x128xf32, #tpu.memory_space<vmem>>, %arg8: memref<16x32xbf16, #tpu.memory_space<vmem>>, %arg9: memref<16x1xf32, #tpu.memory_space<vmem>>, %arg10: memref<1x16x128xf32, #tpu.memory_space<vmem>>, %arg11: memref<4x1x128xf32, #tpu.memory_space<vmem>>, %arg12: memref<4x1x128xf32, #tpu.memory_space<vmem>>, %arg13: memref<4x8x128xf32, #tpu.memory_space<vmem>>) attributes {dimension_semantics = [#tpu.dimension_semantics<parallel>, #tpu.dimension_semantics<parallel>, #tpu.dimension_semantics<arbitrary>], iteration_bounds = array<i64: 2, 1, 1>, scalar_prefetch = 0 : i64, scratch_operands = 3 : i64, tpu.core_type = #tpu.core_type<tc>, window_params = [{transform_indices = @transform_0, window_bounds = array<i64: 1, 4, 128, 8>}, {transform_indices = @transform_1, window_bounds = array<i64: 1, 4, 8, 128>}, {transform_indices = @transform_2, window_bounds = array<i64: 1, 4, 8, 128>}, {transform_indices = @transform_3, window_bounds = array<i64: 1, 128, 1>}, {transform_indices = @transform_4, window_bounds = array<i64: 1, 1, 128>}, {pipeline_mode = #tpu.pipeline_mode<synchronous>, transform_indices = @transform_5, window_bounds = array<i64: 16, 32>}, {pipeline_mode = #tpu.pipeline_mode<synchronous>, transform_indices = @transform_6, window_bounds = array<i64: 16, 1>}, {transform_indices = @transform_7, window_bounds = array<i64: 1, 16, 128>}]} {
    %c0_i32 = arith.constant 0 : i32
    %0 = arith.cmpi eq, %arg2, %c0_i32 : i32
    %1 = arith.extui %0 : i1 to i32
    %c0_i32_0 = arith.constant 0 : i32
    %2 = arith.cmpi ne, %1, %c0_i32_0 : i32
    scf.if %2 {
      %cst_137 = arith.constant -1.000000e+30 : f32
      %172 = vector.broadcast %cst_137 : f32 to vector<4x1x128xf32>
      %c0_138 = arith.constant 0 : index
      %c0_139 = arith.constant 0 : index
      %c0_140 = arith.constant 0 : index
      %173 = vector.load %arg11[%c0_138, %c0_139, %c0_140] : memref<4x1x128xf32, #tpu.memory_space<vmem>>, vector<4x1x128xf32>
      tpu.vector_store %arg11[%c0_138, %c0_139, %c0_140], %172 {strides = array<i32>} : memref<4x1x128xf32, #tpu.memory_space<vmem>>, vector<4x1x128xf32>,
      %cst_141 = arith.constant 0.000000e+00 : f32
      %174 = vector.broadcast %cst_141 : f32 to vector<4x1x128xf32>
      %c0_142 = arith.constant 0 : index
      %c0_143 = arith.constant 0 : index
      %c0_144 = arith.constant 0 : index
      %175 = vector.load %arg12[%c0_142, %c0_143, %c0_144] : memref<4x1x128xf32, #tpu.memory_space<vmem>>, vector<4x1x128xf32>
      tpu.vector_store %arg12[%c0_142, %c0_143, %c0_144], %174 {strides = array<i32>} : memref<4x1x128xf32, #tpu.memory_space<vmem>>, vector<4x1x128xf32>,
      %cst_145 = arith.constant 0.000000e+00 : f32
      %176 = vector.broadcast %cst_145 : f32 to vector<4x8x128xf32>
      %c0_146 = arith.constant 0 : index
      %c0_147 = arith.constant 0 : index
      %c0_148 = arith.constant 0 : index
      %177 = vector.load %arg13[%c0_146, %c0_147, %c0_148] : memref<4x8x128xf32, #tpu.memory_space<vmem>>, vector<4x8x128xf32>
      tpu.vector_store %arg13[%c0_146, %c0_147, %c0_148], %176 {strides = array<i32>} : memref<4x8x128xf32, #tpu.memory_space<vmem>>, vector<4x8x128xf32>,
    } else {
    }
    %c0 = arith.constant 0 : index
    %c0_1 = arith.constant 0 : index
    %c0_2 = arith.constant 0 : index
    %3 = vector.load %arg6[%c0, %c0_1, %c0_2] : memref<1x128x1xf32, #tpu.memory_space<vmem>>, vector<1x128x1xf32>
    %4 = vector.shape_cast %3 : vector<1x128x1xf32> to vector<128x1xf32>
    %c0_3 = arith.constant 0 : index
    %c0_4 = arith.constant 0 : index
    %c0_5 = arith.constant 0 : index
    %c0_6 = arith.constant 0 : index
    %5 = vector.load %arg3[%c0_3, %c0_4, %c0_5, %c0_6] : memref<1x4x128x8xbf16, #tpu.memory_space<vmem>>, vector<1x1x128x8xbf16>
    %6 = vector.shape_cast %5 : vector<1x1x128x8xbf16> to vector<128x8xbf16>
    %c0_7 = arith.constant 0 : index
    %c0_8 = arith.constant 0 : index
    %c0_9 = arith.constant 0 : index
    %c0_10 = arith.constant 0 : index
    %7 = vector.load %arg5[%c0_7, %c0_8, %c0_9, %c0_10] : memref<1x4x8x128xbf16, #tpu.memory_space<vmem>>, vector<1x1x8x128xbf16>
    %8 = vector.shape_cast %7 : vector<1x1x8x128xbf16> to vector<8x128xbf16>
    %c0_11 = arith.constant 0 : index
    %c0_12 = arith.constant 0 : index
    %c0_13 = arith.constant 0 : index
    %c0_14 = arith.constant 0 : index
    %9 = vector.load %arg4[%c0_11, %c0_12, %c0_13, %c0_14] : memref<1x4x8x128xbf16, #tpu.memory_space<vmem>>, vector<1x1x8x128xbf16>
    %10 = vector.shape_cast %9 : vector<1x1x8x128xbf16> to vector<8x128xbf16>
    %cst = arith.constant dense<0.000000e+00> : vector<128x128xf32>
    %11 = tpu.matmul %6, %8, %cst {dimension_numbers = #tpu.dot_dimension_numbers<[1], [0], [0], [1], [0, 0, 1, 1], [], []>} : vector<128x8xbf16>, vector<8x128xbf16>, vector<128x128xf32> -> vector<128x128xf32>
    %12 = vector.broadcast %4 : vector<128x1xf32> to vector<128x128xf32>
    %13 = arith.addf %11, %12 : vector<128x128xf32>
    %c0_15 = arith.constant 0 : index
    %c0_16 = arith.constant 0 : index
    %c0_17 = arith.constant 0 : index
    %14 = vector.load %arg11[%c0_15, %c0_16, %c0_17] : memref<4x1x128xf32, #tpu.memory_space<vmem>>, vector<1x1x128xf32>
    %15 = vector.shape_cast %14 : vector<1x1x128xf32> to vector<1x128xf32>
    %cst_18 = arith.constant dense<0xFF800000> : vector<128xf32>
    %16 = vector.multi_reduction <maximumf>, %13, %cst_18 [0] : vector<128x128xf32> to vector<128xf32>
    %17 = vector.shape_cast %16 : vector<128xf32> to vector<1x128xf32>
    %18 = arith.maximumf %15, %17 : vector<1x128xf32>
    %19 = arith.subf %15, %18 : vector<1x128xf32>
    %20 = math.exp %19 : vector<1x128xf32>
    %21 = vector.broadcast %18 : vector<1x128xf32> to vector<128x128xf32>
    %22 = arith.subf %13, %21 : vector<128x128xf32>
    %23 = math.exp %22 : vector<128x128xf32>
    %c0_19 = arith.constant 0 : index
    %c0_20 = arith.constant 0 : index
    %c0_21 = arith.constant 0 : index
    %24 = vector.load %arg12[%c0_19, %c0_20, %c0_21] : memref<4x1x128xf32, #tpu.memory_space<vmem>>, vector<1x1x128xf32>
    %25 = vector.shape_cast %24 : vector<1x1x128xf32> to vector<1x128xf32>
    %26 = arith.mulf %20, %25 : vector<1x128xf32>
    %cst_22 = arith.constant dense<0.000000e+00> : vector<128xf32>
    %27 = vector.multi_reduction <add>, %23, %cst_22 [0] : vector<128x128xf32> to vector<128xf32>
    %28 = vector.shape_cast %27 : vector<128xf32> to vector<1x128xf32>
    %29 = arith.addf %26, %28 : vector<1x128xf32>
    %c0_23 = arith.constant 0 : index
    %c0_24 = arith.constant 0 : index
    %c0_25 = arith.constant 0 : index
    %30 = vector.load %arg12[%c0_23, %c0_24, %c0_25] : memref<4x1x128xf32, #tpu.memory_space<vmem>>, vector<1x1x128xf32>
    %31 = vector.shape_cast %30 : vector<1x1x128xf32> to vector<1x128xf32>
    %32 = vector.shape_cast %29 : vector<1x128xf32> to vector<1x1x128xf32>
    tpu.vector_store %arg12[%c0_23, %c0_24, %c0_25], %32 {strides = array<i32>} : memref<4x1x128xf32, #tpu.memory_space<vmem>>, vector<1x1x128xf32>,
    %33 = arith.truncf %23 : vector<128x128xf32> to vector<128x128xbf16>
    %cst_26 = arith.constant dense<0.000000e+00> : vector<8x128xf32>
    %34 = tpu.matmul %10, %33, %cst_26 {dimension_numbers = #tpu.dot_dimension_numbers<[1], [0], [0], [1], [0, 0, 1, 1], [], []>} : vector<8x128xbf16>, vector<128x128xbf16>, vector<8x128xf32> -> vector<8x128xf32>
    %c0_27 = arith.constant 0 : index
    %c0_28 = arith.constant 0 : index
    %c0_29 = arith.constant 0 : index
    %35 = vector.load %arg13[%c0_27, %c0_28, %c0_29] : memref<4x8x128xf32, #tpu.memory_space<vmem>>, vector<1x8x128xf32>
    %36 = vector.shape_cast %35 : vector<1x8x128xf32> to vector<8x128xf32>
    %37 = vector.broadcast %20 : vector<1x128xf32> to vector<8x128xf32>
    %38 = arith.mulf %37, %36 : vector<8x128xf32>
    %39 = arith.addf %38, %34 : vector<8x128xf32>
    %c0_30 = arith.constant 0 : index
    %c0_31 = arith.constant 0 : index
    %c0_32 = arith.constant 0 : index
    %40 = vector.load %arg13[%c0_30, %c0_31, %c0_32] : memref<4x8x128xf32, #tpu.memory_space<vmem>>, vector<1x8x128xf32>
    %41 = vector.shape_cast %40 : vector<1x8x128xf32> to vector<8x128xf32>
    %42 = vector.shape_cast %39 : vector<8x128xf32> to vector<1x8x128xf32>
    tpu.vector_store %arg13[%c0_30, %c0_31, %c0_32], %42 {strides = array<i32>} : memref<4x8x128xf32, #tpu.memory_space<vmem>>, vector<1x8x128xf32>,
    %c0_33 = arith.constant 0 : index
    %c0_34 = arith.constant 0 : index
    %c0_35 = arith.constant 0 : index
    %43 = vector.load %arg11[%c0_33, %c0_34, %c0_35] : memref<4x1x128xf32, #tpu.memory_space<vmem>>, vector<1x1x128xf32>
    %44 = vector.shape_cast %43 : vector<1x1x128xf32> to vector<1x128xf32>
    %45 = vector.shape_cast %18 : vector<1x128xf32> to vector<1x1x128xf32>
    tpu.vector_store %arg11[%c0_33, %c0_34, %c0_35], %45 {strides = array<i32>} : memref<4x1x128xf32, #tpu.memory_space<vmem>>, vector<1x1x128xf32>,
    %c0_36 = arith.constant 0 : index
    %c1 = arith.constant 1 : index
    %c0_37 = arith.constant 0 : index
    %c0_38 = arith.constant 0 : index
    %46 = vector.load %arg3[%c0_36, %c1, %c0_37, %c0_38] : memref<1x4x128x8xbf16, #tpu.memory_space<vmem>>, vector<1x1x128x8xbf16>
    %47 = vector.shape_cast %46 : vector<1x1x128x8xbf16> to vector<128x8xbf16>
    %c0_39 = arith.constant 0 : index
    %c1_40 = arith.constant 1 : index
    %c0_41 = arith.constant 0 : index
    %c0_42 = arith.constant 0 : index
    %48 = vector.load %arg5[%c0_39, %c1_40, %c0_41, %c0_42] : memref<1x4x8x128xbf16, #tpu.memory_space<vmem>>, vector<1x1x8x128xbf16>
    %49 = vector.shape_cast %48 : vector<1x1x8x128xbf16> to vector<8x128xbf16>
    %c0_43 = arith.constant 0 : index
    %c1_44 = arith.constant 1 : index
    %c0_45 = arith.constant 0 : index
    %c0_46 = arith.constant 0 : index
    %50 = vector.load %arg4[%c0_43, %c1_44, %c0_45, %c0_46] : memref<1x4x8x128xbf16, #tpu.memory_space<vmem>>, vector<1x1x8x128xbf16>
    %51 = vector.shape_cast %50 : vector<1x1x8x128xbf16> to vector<8x128xbf16>
    %cst_47 = arith.constant dense<0.000000e+00> : vector<128x128xf32>
    %52 = tpu.matmul %47, %49, %cst_47 {dimension_numbers = #tpu.dot_dimension_numbers<[1], [0], [0], [1], [0, 0, 1, 1], [], []>} : vector<128x8xbf16>, vector<8x128xbf16>, vector<128x128xf32> -> vector<128x128xf32>
    %53 = vector.broadcast %4 : vector<128x1xf32> to vector<128x128xf32>
    %54 = arith.addf %52, %53 : vector<128x128xf32>
    %c1_48 = arith.constant 1 : index
    %c0_49 = arith.constant 0 : index
    %c0_50 = arith.constant 0 : index
    %55 = vector.load %arg11[%c1_48, %c0_49, %c0_50] : memref<4x1x128xf32, #tpu.memory_space<vmem>>, vector<1x1x128xf32>
    %56 = vector.shape_cast %55 : vector<1x1x128xf32> to vector<1x128xf32>
    %cst_51 = arith.constant dense<0xFF800000> : vector<128xf32>
    %57 = vector.multi_reduction <maximumf>, %54, %cst_51 [0] : vector<128x128xf32> to vector<128xf32>
    %58 = vector.shape_cast %57 : vector<128xf32> to vector<1x128xf32>
    %59 = arith.maximumf %56, %58 : vector<1x128xf32>
    %60 = arith.subf %56, %59 : vector<1x128xf32>
    %61 = math.exp %60 : vector<1x128xf32>
    %62 = vector.broadcast %59 : vector<1x128xf32> to vector<128x128xf32>
    %63 = arith.subf %54, %62 : vector<128x128xf32>
    %64 = math.exp %63 : vector<128x128xf32>
    %c1_52 = arith.constant 1 : index
    %c0_53 = arith.constant 0 : index
    %c0_54 = arith.constant 0 : index
    %65 = vector.load %arg12[%c1_52, %c0_53, %c0_54] : memref<4x1x128xf32, #tpu.memory_space<vmem>>, vector<1x1x128xf32>
    %66 = vector.shape_cast %65 : vector<1x1x128xf32> to vector<1x128xf32>
    %67 = arith.mulf %61, %66 : vector<1x128xf32>
    %cst_55 = arith.constant dense<0.000000e+00> : vector<128xf32>
    %68 = vector.multi_reduction <add>, %64, %cst_55 [0] : vector<128x128xf32> to vector<128xf32>
    %69 = vector.shape_cast %68 : vector<128xf32> to vector<1x128xf32>
    %70 = arith.addf %67, %69 : vector<1x128xf32>
    %c1_56 = arith.constant 1 : index
    %c0_57 = arith.constant 0 : index
    %c0_58 = arith.constant 0 : index
    %71 = vector.load %arg12[%c1_56, %c0_57, %c0_58] : memref<4x1x128xf32, #tpu.memory_space<vmem>>, vector<1x1x128xf32>
    %72 = vector.shape_cast %71 : vector<1x1x128xf32> to vector<1x128xf32>
    %73 = vector.shape_cast %70 : vector<1x128xf32> to vector<1x1x128xf32>
    tpu.vector_store %arg12[%c1_56, %c0_57, %c0_58], %73 {strides = array<i32>} : memref<4x1x128xf32, #tpu.memory_space<vmem>>, vector<1x1x128xf32>,
    %74 = arith.truncf %64 : vector<128x128xf32> to vector<128x128xbf16>
    %cst_59 = arith.constant dense<0.000000e+00> : vector<8x128xf32>
    %75 = tpu.matmul %51, %74, %cst_59 {dimension_numbers = #tpu.dot_dimension_numbers<[1], [0], [0], [1], [0, 0, 1, 1], [], []>} : vector<8x128xbf16>, vector<128x128xbf16>, vector<8x128xf32> -> vector<8x128xf32>
    %c1_60 = arith.constant 1 : index
    %c0_61 = arith.constant 0 : index
    %c0_62 = arith.constant 0 : index
    %76 = vector.load %arg13[%c1_60, %c0_61, %c0_62] : memref<4x8x128xf32, #tpu.memory_space<vmem>>, vector<1x8x128xf32>
    %77 = vector.shape_cast %76 : vector<1x8x128xf32> to vector<8x128xf32>
    %78 = vector.broadcast %61 : vector<1x128xf32> to vector<8x128xf32>
    %79 = arith.mulf %78, %77 : vector<8x128xf32>
    %80 = arith.addf %79, %75 : vector<8x128xf32>
    %c1_63 = arith.constant 1 : index
    %c0_64 = arith.constant 0 : index
    %c0_65 = arith.constant 0 : index
    %81 = vector.load %arg13[%c1_63, %c0_64, %c0_65] : memref<4x8x128xf32, #tpu.memory_space<vmem>>, vector<1x8x128xf32>
    %82 = vector.shape_cast %81 : vector<1x8x128xf32> to vector<8x128xf32>
    %83 = vector.shape_cast %80 : vector<8x128xf32> to vector<1x8x128xf32>
    tpu.vector_store %arg13[%c1_63, %c0_64, %c0_65], %83 {strides = array<i32>} : memref<4x8x128xf32, #tpu.memory_space<vmem>>, vector<1x8x128xf32>,
    %c1_66 = arith.constant 1 : index
    %c0_67 = arith.constant 0 : index
    %c0_68 = arith.constant 0 : index
    %84 = vector.load %arg11[%c1_66, %c0_67, %c0_68] : memref<4x1x128xf32, #tpu.memory_space<vmem>>, vector<1x1x128xf32>
    %85 = vector.shape_cast %84 : vector<1x1x128xf32> to vector<1x128xf32>
    %86 = vector.shape_cast %59 : vector<1x128xf32> to vector<1x1x128xf32>
    tpu.vector_store %arg11[%c1_66, %c0_67, %c0_68], %86 {strides = array<i32>} : memref<4x1x128xf32, #tpu.memory_space<vmem>>, vector<1x1x128xf32>,
    %c0_69 = arith.constant 0 : index
    %c2 = arith.constant 2 : index
    %c0_70 = arith.constant 0 : index
    %c0_71 = arith.constant 0 : index
    %87 = vector.load %arg3[%c0_69, %c2, %c0_70, %c0_71] : memref<1x4x128x8xbf16, #tpu.memory_space<vmem>>, vector<1x1x128x8xbf16>
    %88 = vector.shape_cast %87 : vector<1x1x128x8xbf16> to vector<128x8xbf16>
    %c0_72 = arith.constant 0 : index
    %c2_73 = arith.constant 2 : index
    %c0_74 = arith.constant 0 : index
    %c0_75 = arith.constant 0 : index
    %89 = vector.load %arg5[%c0_72, %c2_73, %c0_74, %c0_75] : memref<1x4x8x128xbf16, #tpu.memory_space<vmem>>, vector<1x1x8x128xbf16>
    %90 = vector.shape_cast %89 : vector<1x1x8x128xbf16> to vector<8x128xbf16>
    %c0_76 = arith.constant 0 : index
    %c2_77 = arith.constant 2 : index
    %c0_78 = arith.constant 0 : index
    %c0_79 = arith.constant 0 : index
    %91 = vector.load %arg4[%c0_76, %c2_77, %c0_78, %c0_79] : memref<1x4x8x128xbf16, #tpu.memory_space<vmem>>, vector<1x1x8x128xbf16>
    %92 = vector.shape_cast %91 : vector<1x1x8x128xbf16> to vector<8x128xbf16>
    %cst_80 = arith.constant dense<0.000000e+00> : vector<128x128xf32>
    %93 = tpu.matmul %88, %90, %cst_80 {dimension_numbers = #tpu.dot_dimension_numbers<[1], [0], [0], [1], [0, 0, 1, 1], [], []>} : vector<128x8xbf16>, vector<8x128xbf16>, vector<128x128xf32> -> vector<128x128xf32>
    %94 = vector.broadcast %4 : vector<128x1xf32> to vector<128x128xf32>
    %95 = arith.addf %93, %94 : vector<128x128xf32>
    %c2_81 = arith.constant 2 : index
    %c0_82 = arith.constant 0 : index
    %c0_83 = arith.constant 0 : index
    %96 = vector.load %arg11[%c2_81, %c0_82, %c0_83] : memref<4x1x128xf32, #tpu.memory_space<vmem>>, vector<1x1x128xf32>
    %97 = vector.shape_cast %96 : vector<1x1x128xf32> to vector<1x128xf32>
    %cst_84 = arith.constant dense<0xFF800000> : vector<128xf32>
    %98 = vector.multi_reduction <maximumf>, %95, %cst_84 [0] : vector<128x128xf32> to vector<128xf32>
    %99 = vector.shape_cast %98 : vector<128xf32> to vector<1x128xf32>
    %100 = arith.maximumf %97, %99 : vector<1x128xf32>
    %101 = arith.subf %97, %100 : vector<1x128xf32>
    %102 = math.exp %101 : vector<1x128xf32>
    %103 = vector.broadcast %100 : vector<1x128xf32> to vector<128x128xf32>
    %104 = arith.subf %95, %103 : vector<128x128xf32>
    %105 = math.exp %104 : vector<128x128xf32>
    %c2_85 = arith.constant 2 : index
    %c0_86 = arith.constant 0 : index
    %c0_87 = arith.constant 0 : index
    %106 = vector.load %arg12[%c2_85, %c0_86, %c0_87] : memref<4x1x128xf32, #tpu.memory_space<vmem>>, vector<1x1x128xf32>
    %107 = vector.shape_cast %106 : vector<1x1x128xf32> to vector<1x128xf32>
    %108 = arith.mulf %102, %107 : vector<1x128xf32>
    %cst_88 = arith.constant dense<0.000000e+00> : vector<128xf32>
    %109 = vector.multi_reduction <add>, %105, %cst_88 [0] : vector<128x128xf32> to vector<128xf32>
    %110 = vector.shape_cast %109 : vector<128xf32> to vector<1x128xf32>
    %111 = arith.addf %108, %110 : vector<1x128xf32>
    %c2_89 = arith.constant 2 : index
    %c0_90 = arith.constant 0 : index
    %c0_91 = arith.constant 0 : index
    %112 = vector.load %arg12[%c2_89, %c0_90, %c0_91] : memref<4x1x128xf32, #tpu.memory_space<vmem>>, vector<1x1x128xf32>
    %113 = vector.shape_cast %112 : vector<1x1x128xf32> to vector<1x128xf32>
    %114 = vector.shape_cast %111 : vector<1x128xf32> to vector<1x1x128xf32>
    tpu.vector_store %arg12[%c2_89, %c0_90, %c0_91], %114 {strides = array<i32>} : memref<4x1x128xf32, #tpu.memory_space<vmem>>, vector<1x1x128xf32>,
    %115 = arith.truncf %105 : vector<128x128xf32> to vector<128x128xbf16>
    %cst_92 = arith.constant dense<0.000000e+00> : vector<8x128xf32>
    %116 = tpu.matmul %92, %115, %cst_92 {dimension_numbers = #tpu.dot_dimension_numbers<[1], [0], [0], [1], [0, 0, 1, 1], [], []>} : vector<8x128xbf16>, vector<128x128xbf16>, vector<8x128xf32> -> vector<8x128xf32>
    %c2_93 = arith.constant 2 : index
    %c0_94 = arith.constant 0 : index
    %c0_95 = arith.constant 0 : index
    %117 = vector.load %arg13[%c2_93, %c0_94, %c0_95] : memref<4x8x128xf32, #tpu.memory_space<vmem>>, vector<1x8x128xf32>
    %118 = vector.shape_cast %117 : vector<1x8x128xf32> to vector<8x128xf32>
    %119 = vector.broadcast %102 : vector<1x128xf32> to vector<8x128xf32>
    %120 = arith.mulf %119, %118 : vector<8x128xf32>
    %121 = arith.addf %120, %116 : vector<8x128xf32>
    %c2_96 = arith.constant 2 : index
    %c0_97 = arith.constant 0 : index
    %c0_98 = arith.constant 0 : index
    %122 = vector.load %arg13[%c2_96, %c0_97, %c0_98] : memref<4x8x128xf32, #tpu.memory_space<vmem>>, vector<1x8x128xf32>
    %123 = vector.shape_cast %122 : vector<1x8x128xf32> to vector<8x128xf32>
    %124 = vector.shape_cast %121 : vector<8x128xf32> to vector<1x8x128xf32>
    tpu.vector_store %arg13[%c2_96, %c0_97, %c0_98], %124 {strides = array<i32>} : memref<4x8x128xf32, #tpu.memory_space<vmem>>, vector<1x8x128xf32>,
    %c2_99 = arith.constant 2 : index
    %c0_100 = arith.constant 0 : index
    %c0_101 = arith.constant 0 : index
    %125 = vector.load %arg11[%c2_99, %c0_100, %c0_101] : memref<4x1x128xf32, #tpu.memory_space<vmem>>, vector<1x1x128xf32>
    %126 = vector.shape_cast %125 : vector<1x1x128xf32> to vector<1x128xf32>
    %127 = vector.shape_cast %100 : vector<1x128xf32> to vector<1x1x128xf32>
    tpu.vector_store %arg11[%c2_99, %c0_100, %c0_101], %127 {strides = array<i32>} : memref<4x1x128xf32, #tpu.memory_space<vmem>>, vector<1x1x128xf32>,
    %c0_102 = arith.constant 0 : index
    %c3 = arith.constant 3 : index
    %c0_103 = arith.constant 0 : index
    %c0_104 = arith.constant 0 : index
    %128 = vector.load %arg3[%c0_102, %c3, %c0_103, %c0_104] : memref<1x4x128x8xbf16, #tpu.memory_space<vmem>>, vector<1x1x128x8xbf16>
    %129 = vector.shape_cast %128 : vector<1x1x128x8xbf16> to vector<128x8xbf16>
    %c0_105 = arith.constant 0 : index
    %c3_106 = arith.constant 3 : index
    %c0_107 = arith.constant 0 : index
    %c0_108 = arith.constant 0 : index
    %130 = vector.load %arg5[%c0_105, %c3_106, %c0_107, %c0_108] : memref<1x4x8x128xbf16, #tpu.memory_space<vmem>>, vector<1x1x8x128xbf16>
    %131 = vector.shape_cast %130 : vector<1x1x8x128xbf16> to vector<8x128xbf16>
    %c0_109 = arith.constant 0 : index
    %c3_110 = arith.constant 3 : index
    %c0_111 = arith.constant 0 : index
    %c0_112 = arith.constant 0 : index
    %132 = vector.load %arg4[%c0_109, %c3_110, %c0_111, %c0_112] : memref<1x4x8x128xbf16, #tpu.memory_space<vmem>>, vector<1x1x8x128xbf16>
    %133 = vector.shape_cast %132 : vector<1x1x8x128xbf16> to vector<8x128xbf16>
    %cst_113 = arith.constant dense<0.000000e+00> : vector<128x128xf32>
    %134 = tpu.matmul %129, %131, %cst_113 {dimension_numbers = #tpu.dot_dimension_numbers<[1], [0], [0], [1], [0, 0, 1, 1], [], []>} : vector<128x8xbf16>, vector<8x128xbf16>, vector<128x128xf32> -> vector<128x128xf32>
    %135 = vector.broadcast %4 : vector<128x1xf32> to vector<128x128xf32>
    %136 = arith.addf %134, %135 : vector<128x128xf32>
    %c3_114 = arith.constant 3 : index
    %c0_115 = arith.constant 0 : index
    %c0_116 = arith.constant 0 : index
    %137 = vector.load %arg11[%c3_114, %c0_115, %c0_116] : memref<4x1x128xf32, #tpu.memory_space<vmem>>, vector<1x1x128xf32>
    %138 = vector.shape_cast %137 : vector<1x1x128xf32> to vector<1x128xf32>
    %cst_117 = arith.constant dense<0xFF800000> : vector<128xf32>
    %139 = vector.multi_reduction <maximumf>, %136, %cst_117 [0] : vector<128x128xf32> to vector<128xf32>
    %140 = vector.shape_cast %139 : vector<128xf32> to vector<1x128xf32>
    %141 = arith.maximumf %138, %140 : vector<1x128xf32>
    %142 = arith.subf %138, %141 : vector<1x128xf32>
    %143 = math.exp %142 : vector<1x128xf32>
    %144 = vector.broadcast %141 : vector<1x128xf32> to vector<128x128xf32>
    %145 = arith.subf %136, %144 : vector<128x128xf32>
    %146 = math.exp %145 : vector<128x128xf32>
    %c3_118 = arith.constant 3 : index
    %c0_119 = arith.constant 0 : index
    %c0_120 = arith.constant 0 : index
    %147 = vector.load %arg12[%c3_118, %c0_119, %c0_120] : memref<4x1x128xf32, #tpu.memory_space<vmem>>, vector<1x1x128xf32>
    %148 = vector.shape_cast %147 : vector<1x1x128xf32> to vector<1x128xf32>
    %149 = arith.mulf %143, %148 : vector<1x128xf32>
    %cst_121 = arith.constant dense<0.000000e+00> : vector<128xf32>
    %150 = vector.multi_reduction <add>, %146, %cst_121 [0] : vector<128x128xf32> to vector<128xf32>
    %151 = vector.shape_cast %150 : vector<128xf32> to vector<1x128xf32>
    %152 = arith.addf %149, %151 : vector<1x128xf32>
    %c3_122 = arith.constant 3 : index
    %c0_123 = arith.constant 0 : index
    %c0_124 = arith.constant 0 : index
    %153 = vector.load %arg12[%c3_122, %c0_123, %c0_124] : memref<4x1x128xf32, #tpu.memory_space<vmem>>, vector<1x1x128xf32>
    %154 = vector.shape_cast %153 : vector<1x1x128xf32> to vector<1x128xf32>
    %155 = vector.shape_cast %152 : vector<1x128xf32> to vector<1x1x128xf32>
    tpu.vector_store %arg12[%c3_122, %c0_123, %c0_124], %155 {strides = array<i32>} : memref<4x1x128xf32, #tpu.memory_space<vmem>>, vector<1x1x128xf32>,
    %156 = arith.truncf %146 : vector<128x128xf32> to vector<128x128xbf16>
    %cst_125 = arith.constant dense<0.000000e+00> : vector<8x128xf32>
    %157 = tpu.matmul %133, %156, %cst_125 {dimension_numbers = #tpu.dot_dimension_numbers<[1], [0], [0], [1], [0, 0, 1, 1], [], []>} : vector<8x128xbf16>, vector<128x128xbf16>, vector<8x128xf32> -> vector<8x128xf32>
    %c3_126 = arith.constant 3 : index
    %c0_127 = arith.constant 0 : index
    %c0_128 = arith.constant 0 : index
    %158 = vector.load %arg13[%c3_126, %c0_127, %c0_128] : memref<4x8x128xf32, #tpu.memory_space<vmem>>, vector<1x8x128xf32>
    %159 = vector.shape_cast %158 : vector<1x8x128xf32> to vector<8x128xf32>
    %160 = vector.broadcast %143 : vector<1x128xf32> to vector<8x128xf32>
    %161 = arith.mulf %160, %159 : vector<8x128xf32>
    %162 = arith.addf %161, %157 : vector<8x128xf32>
    %c3_129 = arith.constant 3 : index
    %c0_130 = arith.constant 0 : index
    %c0_131 = arith.constant 0 : index
    %163 = vector.load %arg13[%c3_129, %c0_130, %c0_131] : memref<4x8x128xf32, #tpu.memory_space<vmem>>, vector<1x8x128xf32>
    %164 = vector.shape_cast %163 : vector<1x8x128xf32> to vector<8x128xf32>
    %165 = vector.shape_cast %162 : vector<8x128xf32> to vector<1x8x128xf32>
    tpu.vector_store %arg13[%c3_129, %c0_130, %c0_131], %165 {strides = array<i32>} : memref<4x8x128xf32, #tpu.memory_space<vmem>>, vector<1x8x128xf32>,
    %c3_132 = arith.constant 3 : index
    %c0_133 = arith.constant 0 : index
    %c0_134 = arith.constant 0 : index
    %166 = vector.load %arg11[%c3_132, %c0_133, %c0_134] : memref<4x1x128xf32, #tpu.memory_space<vmem>>, vector<1x1x128xf32>
    %167 = vector.shape_cast %166 : vector<1x1x128xf32> to vector<1x128xf32>
    %168 = vector.shape_cast %141 : vector<1x128xf32> to vector<1x1x128xf32>
    tpu.vector_store %arg11[%c3_132, %c0_133, %c0_134], %168 {strides = array<i32>} : memref<4x1x128xf32, #tpu.memory_space<vmem>>, vector<1x1x128xf32>,
    %c0_i32_135 = arith.constant 0 : i32
    %169 = arith.cmpi eq, %arg2, %c0_i32_135 : i32
    %170 = arith.extui %169 : i1 to i32
    %c0_i32_136 = arith.constant 0 : i32
    %171 = arith.cmpi ne, %170, %c0_i32_136 : i32
    scf.if %171 {
      %c0_137 = arith.constant 0 : index
      %c0_138 = arith.constant 0 : index
      %c0_139 = arith.constant 0 : index
      %172 = vector.load %arg12[%c0_137, %c0_138, %c0_139] : memref<4x1x128xf32, #tpu.memory_space<vmem>>, vector<4x1x128xf32>
      %173 = tpu.reciprocal %172 {approx = true} : vector<4x1x128xf32> -> vector<4x1x128xf32>
      %c0_140 = arith.constant 0 : index
      %c0_141 = arith.constant 0 : index
      %c0_142 = arith.constant 0 : index
      %174 = vector.load %arg13[%c0_140, %c0_141, %c0_142] : memref<4x8x128xf32, #tpu.memory_space<vmem>>, vector<4x8x128xf32>
      %175 = vector.broadcast %173 : vector<4x1x128xf32> to vector<4x8x128xf32>
      %176 = arith.mulf %174, %175 : vector<4x8x128xf32>
      %177 = arith.truncf %176 : vector<4x8x128xf32> to vector<4x8x128xbf16>
      %178 = vector.shape_cast %177 : vector<4x8x128xbf16> to vector<32x128xbf16>
      %c0_143 = arith.constant 0 : index
      %c0_144 = arith.constant 0 : index
      %179 = vector.load %arg8[%c0_143, %c0_144] : memref<16x32xbf16, #tpu.memory_space<vmem>>, vector<16x32xbf16>
      %cst_145 = arith.constant dense<0.000000e+00> : vector<16x128xf32>
      %180 = tpu.matmul %179, %178, %cst_145 {dimension_numbers = #tpu.dot_dimension_numbers<[1], [0], [0], [1], [0, 0, 1, 1], [], []>} : vector<16x32xbf16>, vector<32x128xbf16>, vector<16x128xf32> -> vector<16x128xf32>
      %c0_146 = arith.constant 0 : index
      %c0_147 = arith.constant 0 : index
      %181 = vector.load %arg9[%c0_146, %c0_147] : memref<16x1xf32, #tpu.memory_space<vmem>>, vector<16x1xf32>
      %182 = vector.broadcast %181 : vector<16x1xf32> to vector<16x128xf32>
      %183 = arith.addf %180, %182 : vector<16x128xf32>
      %c0_148 = arith.constant 0 : index
      %c0_149 = arith.constant 0 : index
      %c0_150 = arith.constant 0 : index
      %184 = vector.load %arg7[%c0_148, %c0_149, %c0_150] : memref<1x1x128xf32, #tpu.memory_space<vmem>>, vector<1x1x128xf32>
      %185 = vector.shape_cast %184 : vector<1x1x128xf32> to vector<1x128xf32>
      %186 = vector.broadcast %185 : vector<1x128xf32> to vector<16x128xf32>
      %187 = arith.mulf %183, %186 : vector<16x128xf32>
      %c0_151 = arith.constant 0 : index
      %c0_152 = arith.constant 0 : index
      %c0_153 = arith.constant 0 : index
      %188 = vector.load %arg10[%c0_151, %c0_152, %c0_153] : memref<1x16x128xf32, #tpu.memory_space<vmem>>, vector<1x16x128xf32>
      %189 = vector.shape_cast %188 : vector<1x16x128xf32> to vector<16x128xf32>
      %190 = vector.shape_cast %187 : vector<16x128xf32> to vector<1x16x128xf32>
      tpu.vector_store %arg10[%c0_151, %c0_152, %c0_153], %190 {strides = array<i32>} : memref<1x16x128xf32, #tpu.memory_space<vmem>>, vector<1x16x128xf32>,
    } else {
    }
    return
  }
  func.func @transform_0(%arg0: i32, %arg1: i32, %arg2: i32) -> (i32, i32, i32, i32) {
    %c0_i32 = arith.constant 0 : i32
    %c0_i32_0 = arith.constant 0 : i32
    %c0_i32_1 = arith.constant 0 : i32
    return %arg0, %c0_i32, %arg2, %c0_i32_0 : i32, i32, i32, i32
  }
  func.func @transform_1(%arg0: i32, %arg1: i32, %arg2: i32) -> (i32, i32, i32, i32) {
    %c0_i32 = arith.constant 0 : i32
    %c0_i32_0 = arith.constant 0 : i32
    %c0_i32_1 = arith.constant 0 : i32
    return %arg0, %c0_i32, %c0_i32_0, %arg2 : i32, i32, i32, i32
  }
  func.func @transform_2(%arg0: i32, %arg1: i32, %arg2: i32) -> (i32, i32, i32, i32) {
    %c0_i32 = arith.constant 0 : i32
    %c0_i32_0 = arith.constant 0 : i32
    %c0_i32_1 = arith.constant 0 : i32
    return %arg0, %c0_i32, %c0_i32_0, %arg1 : i32, i32, i32, i32
  }
  func.func @transform_3(%arg0: i32, %arg1: i32, %arg2: i32) -> (i32, i32, i32) {
    %c0_i32 = arith.constant 0 : i32
    %c0_i32_0 = arith.constant 0 : i32
    return %arg0, %arg2, %c0_i32 : i32, i32, i32
  }
  func.func @transform_4(%arg0: i32, %arg1: i32, %arg2: i32) -> (i32, i32, i32) {
    %c0_i32 = arith.constant 0 : i32
    %c0_i32_0 = arith.constant 0 : i32
    return %arg0, %c0_i32, %arg1 : i32, i32, i32
  }
  func.func @transform_5(%arg0: i32, %arg1: i32, %arg2: i32) -> (i32, i32) {
    %c0_i32 = arith.constant 0 : i32
    %c0_i32_0 = arith.constant 0 : i32
    %c0_i32_1 = arith.constant 0 : i32
    return %c0_i32, %c0_i32_0 : i32, i32
  }
  func.func @transform_6(%arg0: i32, %arg1: i32, %arg2: i32) -> (i32, i32) {
    %c0_i32 = arith.constant 0 : i32
    %c0_i32_0 = arith.constant 0 : i32
    %c0_i32_1 = arith.constant 0 : i32
    return %c0_i32, %c0_i32_0 : i32, i32
  }
  func.func @transform_7(%arg0: i32, %arg1: i32, %arg2: i32) -> (i32, i32, i32) {
    %c0_i32 = arith.constant 0 : i32
    %c0_i32_0 = arith.constant 0 : i32
    return %arg0, %c0_i32, %arg1 : i32, i32, i32
  }
}

</mosaic_0001>

<bundles_post_ra>
// kernel: tpu_custom_call.1
= control target key start
LH: loop header
LB: loop body
LE: loop exit
PB: predicated region body
PF: predicated region fallthrough
CT: control target
= control target key end

     0   :  { %12 = vsyncpa [#allocation6], 0  ;;  %s3890_s0 = inlined_call_operand.vmem [shape: bf16[2,4,128,8], index: 0, kind: input, shape index: {}]   ;;  %s3891_s1 = inlined_call_operand.vmem [shape: bf16[2,4,8,128], index: 1, kind: input, shape index: {}]   ;;  %s3892_s2 = inlined_call_operand.vmem [shape: bf16[2,4,8,128], index: 2, kind: input, shape index: {}]   ;;  %s3893_s3 = inlined_call_operand.vmem [shape: f32[2,128,1], index: 3, kind: input, shape index: {}]   ;;  %s3894_s4 = inlined_call_operand.vmem [shape: f32[2,1,128], index: 4, kind: input, shape index: {}]   ;;  %s3895_s5 = inlined_call_operand.vmem [shape: bf16[16,32], index: 5, kind: input, shape index: {}]   ;;  %s3896_s6 = inlined_call_operand.vmem [shape: f32[16,1], index: 6, kind: input, shape index: {}]   ;;  %s3897_s7 = inlined_call_operand.hbm [shape: f32[2,16,128], index: 7, kind: output, shape index: {}]  }
   0x1   :  { %14 = vsyncpa [#allocation6 + $0x1], 0  ;;  %s3005_s24 = smov 0   ;;  %s3007_s25 = smov 0  }
   0x2   :  { %s3009_s26 = smov 0   ;;  %s3011_s27 = smov 0  }
   0x3   :  { %s3013_s28 = smov 0   ;;  %s3015_s29 = smov 0  }
   0x4 LB: > { %s2250_s30 = sadd.s32 4294967295, %s2956_s29   ;;  %s2251_s8 = sadd.s32 4294967294, %s2956_s29   ;;  %s2956_s29 = sphi %s3015_s29, %s20_s29   ;;  %s2952_s28 = sphi %s3013_s28, %s3940_s28   ;;  %s2948_s27 = sphi %s3011_s27, %s3939_s27   ;;  %s2944_s26 = sphi %s3009_s26, %s3938_s26   ;;  %s2940_s25 = sphi %s3007_s25, %s3937_s25   ;;  %s2936_s24 = sphi %s3005_s24, %s3936_s24  }
   0x5   : > { %s39_s9 = sadd.s32 1, %s2952_s28  ;;  %s230_s10 = sadd.s32 1, %s2944_s26 }
   0x6   : > { %p41_p0 = scmp.ge.s32.totalorder %s39_s9, 2  ;;  %p240_p1 = scmp.ne.s32.totalorder %s2944_s26, %s2940_s25 }
   0x7   : > { %p241_p2 = scmp.eq.s32.totalorder %s2250_s30, 1  ;;  %p246_p3 = scmp.ne.s32.totalorder %s2940_s25, %s2936_s24 }
   0x8   : > { %s3942_s9 = smov (%p41_p0, %s39_s9), 0  ;;  %p247_p5 = scmp.eq.s32.totalorder %s2251_s8, 1 }
   0x9   : > { %p3045_p4 = por %p241_p2, %p240_p1  ;;  %s225_s12 = ssub.s32 %s2952_s28, %s3942_s9 }
   0xa   : > { %p2254_p6 = scmp.ge.s32.totalorder %s2956_s29, 1  ;;  %p228_p7 = scmp.eq.s32.totalorder %s225_s12, 0 }
   0xb   : > { %p3052_p8 = por %p247_p5, %p246_p3  ;;  %p328_p9 = scmp.lt.s32.totalorder %s2956_s29, 3 }
   0xc   : > { %s3058_s14 = scalar_select %p228_p7, %s2944_s26, %s230_s10  }
   0xd   : > { %p329_p10 = pnand %p2254_p6, %p328_p9 }
   0xf   : > { %332 = sbr.rel (%p329_p10) target bundleno = 903 (0x387), region = 48 }
  0x16   : > { %p396_p11 = scmp.lt.s32.totalorder %s2948_s27, 1  ;;  %v2958_v0 = vmov 0   ;;  %vm633_vm0 = vcmask 1043456   ;;  %vm608_vm1 = vcmask 64512   ;;  %v2004_v37 = vld [vmem:[%s3896_s6 + $0x8] sm:$0xff]  ;;  %v2003_v38 = vld [vmem:[%s3896_s6] sm:$0xff] }
  0x17   : > { %2700 = vset.pattern.permute.xlu1 %v2958_v0  ;;  %2699 = vset.pattern.permute.xlu0 %v2958_v0  ;;  %v2959_v58 = vmov -1e+30   ;;  %v3898_v60 = vmov 0.0   ;;  %vm2961_vm2 = vmmov 0   ;;  %vm2032_vm3 = vcmask 261120   ;;  %s392_s8 = sand.u32 1, %s2940_s25  }
  0x18   : > { %s3062_s15 = scalar_select %p396_p11, %s2948_s27, 1  ;;  %442 = vst [vmem:[#allocation2] sm:$0x1] %v2959_v58  ;;  %443 = vst [vmem:[#allocation2 + $0x1] sm:$0x1] %v2959_v58  ;;  %2492 = vmatprep.subr.bf16.mxu1 %v3898_v60  ;;  %2508 = vmatprep.mubr.msk.bf16.mxu1 %vm2961_vm2, %v3898_v60 }
  0x19   : > { %444 = vst [vmem:[#allocation2 + $0x2] sm:$0x1] %v2959_v58  ;;  %445 = vst [vmem:[#allocation2 + $0x3] sm:$0x1] %v2959_v58  ;;  %s2255_s10 = sshll.u32 %s392_s8, 4 }
  0x1a   : > { %s2392_s16 = sshll.u32 %s3062_s15, 8  ;;  %s2393_s17 = sshll.u32 %s3062_s15, 4  ;;  %446 = vst [vmem:[#allocation3] sm:$0x1] %v3898_v60  ;;  %447 = vst [vmem:[#allocation3 + $0x1] sm:$0x1] %v3898_v60 }
  0x1b   : > { %s3069_s20 = scalar_lea.vmem %s3890_s0, %s2392_s16  ;;  %s3076_s23 = scalar_lea.vmem %s3892_s2, %s2393_s17  ;;  %448 = vst [vmem:[#allocation3 + $0x2] sm:$0x1] %v3898_v60  ;;  %449 = vst [vmem:[#allocation3 + $0x3] sm:$0x1] %v3898_v60 }
  0x1c   : > { %v486_v1 = vld [vmem:[%s3076_s23] sm:$0xf]  ;;  %v2702_v4 = vld [vmem:[%s3069_s20 + $0x8] sm:$0xff]   ;;  %v2703_v5 = vld [vmem:[%s3069_s20 + $0x10] sm:$0xff]   ;;  %s2395_s30 = sshll.u32 %s3062_s15, 7  ;;  %s436_s18 = scalar_lea.vmem %s3894_s4, %s3062_s15 }
  0x1d   : > { %v2701_v2 = vld [vmem:[%s3069_s20] sm:$0xff]   ;;  %2634 = vmatprep.subr.msk.bf16.mxu0 %vm633_vm0, %v486_v1  ;;  %v635_v3 = vsel %vm633_vm0, %v486_v1, 0  ;;  %v2704_v8 = vld [vmem:[%s3069_s20 + $0x18] sm:$0xff]   ;;  %s3096_s12 = scalar_lea.vmem %s3893_s3, %s2395_s30  ;;  %v2330_v10 = vld [vmem:[%s3076_s23 + $0x8] sm:$0xf]  ;;  %s394_s19 = scalar_lea.vmem [#allocation5], %s2255_s10 }
  0x1e   : > { %2475 = vmatpush3.bf16.msra.mxu0 %v635_v3  ;;  %2476 = vmatprep.mubr.msk.bf16.mxu0 %vm608_vm1, %v2701_v2  ;;  %v2296_v6 = vld [vmem:[%s3076_s23 + $0x4] sm:$0xf]  ;;  %v2706_v11 = vld [vmem:[%s3069_s20 + $0x28] sm:$0xff]   ;;  %v456_v12 = vld [vmem:[%s3096_s12 + $0x10] sm:$0xff]  ;;  %v1336_v29 = vsel %vm633_vm0, %v2330_v10, 0  ;;  %s2103_s21 = sshll.u32 %s394_s19, 4  ;;  %s3837_s21 = int_to_ptr.vmem [resolvable:$true] %s2103_s21 }
  0x1f   : > { %2635 = vmatprep.subr.msk.bf16.mxu0 %vm633_vm0, %v2296_v6  ;;  %v984_v7 = vsel %vm633_vm0, %v2296_v6, 0  ;;  %v2705_v9 = vld [vmem:[%s3069_s20 + $0x20] sm:$0xff]   ;;  %500 = vperm.xlu1 %2700, %v456_v12   ;;  %v457_v14 = vld [vmem:[%s3096_s12 + $0x18] sm:$0xff]  ;;  %v455_v15 = vld [vmem:[%s3096_s12 + $0x8] sm:$0xff]  ;;  %s2878_s30 = scalar_lea.vmem %s3837_s21, 256 }
  0x20   : > { %v454_v13 = vld [vmem:[%s3096_s12] sm:$0xff]  ;;  %v2707_v16 = vld [vmem:[%s3069_s20 + $0x30] sm:$0xff]   ;;  %v459_v17 = vld [vmem:[%s3096_s12 + $0x28] sm:$0xff]  ;;  %p2879_p12 = scmp.ne.s32.totalorder %s3837_s21, %s2878_s30 }
  0x21   : > { %2477 = vmatmul.mubr.msk.bf16.vlgmr.msra.gmra.mrb[0].mxu0 %vm608_vm1, %v2702_v4  ;;  %490 = vperm.xlu0 %2699, %v454_v13   ;;  %v458_v18 = vld [vmem:[%s3096_s12 + $0x20] sm:$0xff]  ;;  %v2708_v19 = vld [vmem:[%s3069_s20 + $0x38] sm:$0xff]   ;;  %v460_v21 = vld [vmem:[%s3096_s12 + $0x30] sm:$0xff] }
  0x22   : > { %2480 = vmatprep.mubr.msk.bf16.mxu0 %vm608_vm1, %v2703_v5  ;;  %2513 = vmatpush3.bf16.msra.mxu0 %v984_v7  ;;  %v461_v20 = vld [vmem:[%s3096_s12 + $0x38] sm:$0xff]  ;;  %v2709_v22 = vld [vmem:[%s3069_s20 + $0x40] sm:$0xff]   ;;  %v463_v23 = vld [vmem:[%s3096_s12 + $0x48] sm:$0xff]  ;;  %p2880_p13 = pnand %p2879_p12, %p3045_p4 }
  0x23   : > { %2636 = vmatprep.subr.msk.bf16.mxu0 %vm633_vm0, %v2330_v10  ;;  %505 = vperm.xlu1 %2700, %v457_v14   ;;  %v462_v24 = vld [vmem:[%s3096_s12 + $0x40] sm:$0xff]  ;;  %v2710_v25 = vld [vmem:[%s3069_s20 + $0x48] sm:$0xff]   ;;  %v465_v26 = vld [vmem:[%s3096_s12 + $0x58] sm:$0xff] }
  0x24   : > { %v464_v27 = vld [vmem:[%s3096_s12 + $0x50] sm:$0xff]  ;;  %v467_v30 = vld [vmem:[%s3096_s12 + $0x68] sm:$0xff]  ;;  %v466_v32 = vld [vmem:[%s3096_s12 + $0x60] sm:$0xff]  ;;  %p2881_p0 = pneg %p2880_p13 }
  0x25   : > { %495 = vperm.xlu0 %2699, %v455_v15   ;;  %v2711_v28 = vld [vmem:[%s3069_s20 + $0x50] sm:$0xff]   ;;  %v2364_v31 = vld [vmem:[%s3076_s23 + $0xc] sm:$0xf]  ;;  %v2712_v33 = vld [vmem:[%s3069_s20 + $0x58] sm:$0xff]   ;;  %s3553_s23 = scalar_lea.vmem %s3891_s1, %s2393_s17  ;;  %s3844_s17 = scalar_lea.sflag [#allocation6], %s392_s8 }
  0x26   : > { %v469_v34 = vld [vmem:[%s3096_s12 + $0x78] sm:$0xff]  ;;  %v468_v35 = vld [vmem:[%s3096_s12 + $0x70] sm:$0xff]  ;;  %v2713_v36 = vld [vmem:[%s3069_s20 + $0x60] sm:$0xff]   ;;  %v1688_v45 = vsel %vm633_vm0, %v2364_v31, 0 }
  0x27   : > { %515 = vperm.xlu1 %2700, %v459_v17   ;;  %v2714_v39 = vld [vmem:[%s3069_s20 + $0x68] sm:$0xff]   ;;  %v2715_v40 = vld [vmem:[%s3069_s20 + $0x70] sm:$0xff]   ;;  %v2716_v41 = vld [vmem:[%s3069_s20 + $0x78] sm:$0xff]  }
  0x28   : > { %v2717_v42 = vld [vmem:[%s3069_s20 + $0x80] sm:$0xff]   ;;  %v2718_v43 = vld [vmem:[%s3069_s20 + $0x88] sm:$0xff]   ;;  %v2719_v44 = vld [vmem:[%s3069_s20 + $0x90] sm:$0xff]  }
  0x29   : > { %2481 = vmatmul.mubr.msk.bf16.gmra.mrb[4].mxu0 %vm608_vm1, %v2704_v8  ;;  %510 = vperm.xlu0 %2699, %v458_v18   ;;  %v2720_v46 = vld [vmem:[%s3069_s20 + $0x98] sm:$0xff]   ;;  %v2721_v47 = vld [vmem:[%s3069_s20 + $0xa0] sm:$0xff]   ;;  %v2722_v48 = vld [vmem:[%s3069_s20 + $0xa8] sm:$0xff]  }
  0x2a   : > { %2484 = vmatprep.mubr.msk.bf16.mxu0 %vm608_vm1, %v2705_v9  ;;  %v2723_v49 = vld [vmem:[%s3069_s20 + $0xb0] sm:$0xff]   ;;  %v2724_v50 = vld [vmem:[%s3069_s20 + $0xb8] sm:$0xff]   ;;  %v2725_v51 = vld [vmem:[%s3069_s20 + $0xc0] sm:$0xff]  }
  0x2b   : > { %525 = vperm.xlu1 %2700, %v461_v20   ;;  %v2726_v52 = vld [vmem:[%s3069_s20 + $0xc8] sm:$0xff]   ;;  %v2727_v53 = vld [vmem:[%s3069_s20 + $0xd0] sm:$0xff]   ;;  %v2728_v54 = vld [vmem:[%s3069_s20 + $0xd8] sm:$0xff]  }
  0x2c   : > { %v2729_v55 = vld [vmem:[%s3069_s20 + $0xe0] sm:$0xff]   ;;  %v2730_v56 = vld [vmem:[%s3069_s20 + $0xe8] sm:$0xff]   ;;  %v2731_v57 = vld [vmem:[%s3069_s20 + $0xf0] sm:$0xff]  }
  0x2d   : > { %520 = vperm.xlu0 %2699, %v460_v21   ;;  %v2732_v59 = vld [vmem:[%s3069_s20 + $0xf8] sm:$0xff]   ;;  %s2398_s20 = sshll.u32 %s2948_s27, 8  ;;  %s2962_s27 = smov [#allocation5]  }
  0x2e   : > { %s2882_s10 = sshll.u32 %s2962_s27, 4  ;;  %s2883_s10 = int_to_ptr.vmem [resolvable:$false] %s2882_s10 }
  0x2f   : > { %535 = vperm.xlu1 %2700, %v463_v23   ;;  %s2884_s12 = scalar_lea.vmem %s2883_s10, 512  ;;  %p2885_p1 = scmp.lt.s32.totalorder %s3837_s21, %s2883_s10 }
  0x30   : > { %p2886_p2 = scmp.lt.s32.totalorder %s2884_s12, %s2878_s30 }
  0x31   : > { %2485 = vmatmul.mubr.msk.bf16.gmra.mrb[8].mxu0 %vm608_vm1, %v2706_v11  ;;  %530 = vperm.xlu0 %2699, %v462_v24  }
  0x32   : > { %2488 = vmatprep.mubr.msk.bf16.mxu0 %vm608_vm1, %v2707_v16  ;;  %p2887_p3 = por %p2886_p2, %p2885_p1 }
  0x33   : > { %545 = vperm.xlu1 %2700, %v465_v26  }
  0x34   : > { %p2888_p5 = pnand %p2887_p3, %p2881_p0 }
  0x35   : > { %540 = vperm.xlu0 %2699, %v464_v27  }
  0x37   : > { %555 = vperm.xlu1 %2700, %v467_v30  }
  0x39   : > { %2489 = vmatmul.mubr.msk.bf16.gmra.mrb[12].mxu0 %vm608_vm1, %v2708_v19  ;;  %550 = vperm.xlu0 %2699, %v466_v32  }
  0x3a   : > { %2514 = vmatprep.mubr.msk.bf16.mxu0 %vm608_vm1, %v2709_v22 }
  0x3b   : > { %565 = vperm.xlu1 %2700, %v469_v34  }
  0x3d   : > { %560 = vperm.xlu0 %2699, %v468_v35  }
  0x3f   : > { %2012 = vperm.xlu1 %2700, %v2004_v37  }
  0x41   : > { %2515 = vmatmul.mubr.msk.bf16.vlgmr.msra.gmra.mrb[16].mxu0 %vm608_vm1, %v2710_v25  ;;  %2007 = vperm.xlu0 %2699, %v2003_v38  }
  0x42   : > { %2518 = vmatprep.mubr.msk.bf16.mxu0 %vm608_vm1, %v2711_v28  ;;  %2551 = vmatpush3.bf16.msra.mxu0 %v1336_v29 }
  0x43   : > { %2637 = vmatprep.subr.msk.bf16.mxu0 %vm633_vm0, %v2364_v31 }
  0x49   : > { %2519 = vmatmul.mubr.msk.bf16.gmra.mrb[20].mxu0 %vm608_vm1, %v2712_v33 }
  0x4a   : > { %2522 = vmatprep.mubr.msk.bf16.mxu0 %vm608_vm1, %v2713_v36 }
  0x51   : > { %2523 = vmatmul.mubr.msk.bf16.gmra.mrb[24].mxu0 %vm608_vm1, %v2714_v39 }
  0x52   : > { %2526 = vmatprep.mubr.msk.bf16.mxu0 %vm608_vm1, %v2715_v40 }
  0x59   : > { %2527 = vmatmul.mubr.msk.bf16.gmra.mrb[28].mxu0 %vm608_vm1, %v2716_v41 }
  0x5a   : > { %2552 = vmatprep.mubr.msk.bf16.mxu0 %vm608_vm1, %v2717_v42 }
  0x61   : > { %2553 = vmatmul.mubr.msk.bf16.vlgmr.msra.gmra.mrb[32].mxu0 %vm608_vm1, %v2718_v43 }
  0x62   : > { %2556 = vmatprep.mubr.msk.bf16.mxu0 %vm608_vm1, %v2719_v44  ;;  %2589 = vmatpush3.bf16.msra.mxu0 %v1688_v45 }
  0x63   : > { %2626 = vmatprep.subr.bf16.mxu0 %v3898_v60 }
  0x69   : > { %2557 = vmatmul.mubr.msk.bf16.gmra.mrb[36].mxu0 %vm608_vm1, %v2720_v46 }
  0x6a   : > { %2560 = vmatprep.mubr.msk.bf16.mxu0 %vm608_vm1, %v2721_v47 }
  0x71   : > { %2561 = vmatmul.mubr.msk.bf16.gmra.mrb[40].mxu0 %vm608_vm1, %v2722_v48 }
  0x72   : > { %2564 = vmatprep.mubr.msk.bf16.mxu0 %vm608_vm1, %v2723_v49 }
  0x79   : > { %2565 = vmatmul.mubr.msk.bf16.gmra.mrb[44].mxu0 %vm608_vm1, %v2724_v50 }
  0x7a   : > { %2590 = vmatprep.mubr.msk.bf16.mxu0 %vm608_vm1, %v2725_v51 }
  0x81   : > { %2591 = vmatmul.mubr.msk.bf16.vlgmr.msra.gmra.mrb[48].mxu0 %vm608_vm1, %v2726_v52 }
  0x82   : > { %2594 = vmatprep.mubr.msk.bf16.mxu0 %vm608_vm1, %v2727_v53 }
  0x89   : > { %2595 = vmatmul.mubr.msk.bf16.gmra.mrb[52].mxu0 %vm608_vm1, %v2728_v54 }
  0x8a   : > { %2598 = vmatprep.mubr.msk.bf16.mxu0 %vm608_vm1, %v2729_v55 }
  0x91   : > { %2599 = vmatmul.mubr.msk.bf16.gmra.mrb[56].mxu0 %vm608_vm1, %v2730_v56 }
  0x92   : > { %2602 = vmatprep.mubr.msk.bf16.mxu0 %vm608_vm1, %v2731_v57 }
  0x99   : > { %2603 = vmatmul.mubr.msk.bf16.gmra.mrb[60].mxu0 %vm608_vm1, %v2732_v59 }
  0x9a   : > { %2630 = vmatprep.mubr.msk.bf16.mxu0 %vm2961_vm2, %v3898_v60 }
  0x9e   : > { %v3190_v62 = vpop.permute.xlu1 %500 }
  0xa0   : > { %v3188_v61 = vpop.permute.xlu0 %490 }
  0xa2   : > { %v3194_v0 = vpop.permute.xlu1 %505 }
  0xa4   : > { %v3192_v63 = vpop.permute.xlu0 %495 }
  0xa6   : > { %v3198_v2 = vpop.permute.xlu1 %515 }
  0xa8   : > { %v3196_v1 = vpop.permute.xlu0 %510 }
  0xaa   : > { %v3206_v6 = vpop.permute.xlu1 %525 }
  0xab   : > { %3912 = vst [vmem:[#allocation8_spill] sm:$0xff] %v3206_v6 }
  0xac   : > { %v3204_v3 = vpop.permute.xlu0 %520 }
  0xae   : > { %v3210_v10 = vpop.permute.xlu1 %535 }
  0xb0   : > { %v3208_v9 = vpop.permute.xlu0 %530 }
  0xb2   : > { %v3244_v27 = vpop.permute.xlu1 %545 }
  0xb4   : > { %v3232_v22 = vpop.permute.xlu0 %540 }
  0xb6   : > { %v3260_v38 = vpop.permute.xlu1 %555 }
  0xb8   : > { %v3251_v32 = vpop.permute.xlu0 %550 }
  0xb9   : > { %3913 = vst [vmem:[#allocation9_spill] sm:$0xff] %v3251_v32 }
  0xba   : > { %v3273_v47 = vpop.permute.xlu1 %565 }
  0xbb   : > { %3914 = vst [vmem:[#allocation10_spill] sm:$0xff] %v3273_v47 }
  0xbc   : > { %v3268_v43 = vpop.permute.xlu0 %560 }
  0xf4   : > { %v2478_v4 = vpop.f32.mrb[0].mxu0 }
  0xf5   : > { %v671_v5 = vpop.f32.mrb[1].mxu0  ;;  %v3213_v12 = vadd.f32 %v2478_v4, %v3190_v62 }
  0xf6   : > { %v2479_v7 = vpop.f32.mrb[2].mxu0  ;;  %v3219_v15 = vadd.f32 %v671_v5, %v3188_v61 }
  0xf7   : > { %v674_v8 = vpop.f32.mrb[3].mxu0  ;;  %v3225_v18 = vadd.f32 %v2479_v7, %v3194_v0 }
  0xf8   : > { %v3235_v23 = vadd.f32 %v674_v8, %v3192_v63 }
  0xfc   : > { %v2482_v11 = vpop.f32.mrb[4].mxu0 }
  0xfd   : > { %v3216_v13 = vadd.f32 %v2482_v11, %v3204_v3  ;;  %v687_v14 = vpop.f32.mrb[5].mxu0 }
  0xfe   : > { %v3222_v16 = vadd.f32 %v687_v14, %v3196_v1  ;;  %v2483_v17 = vpop.f32.mrb[6].mxu0 }
  0xff   : > { %v737_v19 = vmax.f32 %v3213_v12, %v3216_v13  ;;  %v3230_v20 = vadd.f32 %v2483_v17, %v3206_v6  ;;  %v690_v21 = vpop.f32.mrb[7].mxu0  ;;  %v761_v17 = vlaneseq }
 0x100   : > { %v735_v24 = vmax.f32 %v3219_v15, %v3222_v16  ;;  %v3240_v25 = vadd.f32 %v690_v21, %v3198_v2 }
 0x101   : > { %v738_v26 = vmax.f32 %v3225_v18, %v3230_v20 }
 0x102   : > { %v736_v28 = vmax.f32 %v3235_v23, %v3240_v25 }
 0x104   : > { %v2486_v29 = vpop.f32.mrb[8].mxu0 }
 0x105   : > { %v3249_v30 = vadd.f32 %v2486_v29, %v3232_v22  ;;  %v703_v31 = vpop.f32.mrb[9].mxu0 }
 0x106   : > { %v3254_v33 = vadd.f32 %v703_v31, %v3208_v9  ;;  %v2487_v34 = vpop.f32.mrb[10].mxu0  ;;  %v762_v31 = vshrl.u32 %v761_v17, 7 }
 0x107   : > { %v741_v35 = vmax.f32 %v737_v19, %v3249_v30  ;;  %v3258_v36 = vadd.f32 %v2487_v34, %v3244_v27  ;;  %v706_v37 = vpop.f32.mrb[11].mxu0 }
 0x108   : > { %v739_v39 = vmax.f32 %v735_v24, %v3254_v33  ;;  %v3264_v40 = vadd.f32 %v706_v37, %v3210_v10 }
 0x109   : > { %v742_v41 = vmax.f32 %v738_v26, %v3258_v36 }
 0x10a   : > { %v740_v42 = vmax.f32 %v736_v28, %v3264_v40 }
 0x10c   : > { %v2490_v44 = vpop.f32.mrb[12].mxu0 }
 0x10d   : > { %v3271_v45 = vadd.f32 %v2490_v44, %v3268_v43  ;;  %v719_v46 = vpop.f32.mrb[13].mxu0 }
 0x10e   : > { %v3276_v48 = vadd.f32 %v719_v46, %v3251_v32  ;;  %v2491_v49 = vpop.f32.mrb[14].mxu0 }
 0x10f   : > { %v745_v50 = vmax.f32 %v741_v35, %v3271_v45  ;;  %v3280_v51 = vadd.f32 %v2491_v49, %v3273_v47  ;;  %v722_v52 = vpop.f32.mrb[15].mxu0 }
 0x110   : > { %v743_v53 = vmax.f32 %v739_v39, %v3276_v48  ;;  %v723_v54 = vadd.f32 %v722_v52, %v3260_v38 }
 0x111   : > { %v746_v55 = vmax.f32 %v742_v41, %v3280_v51 }
 0x112   : > { %v744_v56 = vmax.f32 %v740_v42, %v723_v54 }
 0x113   : > { %v748_v57 = vmax.f32 %v745_v50, %v746_v55 }
 0x114   : > { %v747_v58 = vmax.f32 %v743_v53, %v744_v56  ;;  %v2516_v59 = vpop.f32.mrb[16].mxu0  ;;  %v3313_v53 = vld [vmem:[#allocation2] sm:$0x1] }
 0x115   : > { %v1020_v4 = vpop.f32.mrb[17].mxu0  ;;  %v3286_v24 = vadd.f32 %v2516_v59, %v3190_v62 }
 0x116   : > { %v749_v5 = vmax.f32 %v747_v58, %v748_v57  ;;  %v2517_v7 = vpop.f32.mrb[18].mxu0  ;;  %v3292_v34 = vadd.f32 %v1020_v4, %v3188_v61  ;;  %v3317_v57 = vsub.s32 0, %v762_v31 }
 0x117   : > { %v1023_v8 = vpop.f32.mrb[19].mxu0  ;;  %v3298_v39 = vadd.f32 %v2517_v7, %v3194_v0 }
 0x118   : > { %v750_v11 = vrot.slane %v749_v5, 4  ;;  %v3306_v49 = vadd.f32 %v1023_v8, %v3192_v63 }
 0x11a   : > { %v751_v14 = vmax.f32 %v749_v5, %v750_v11 }
 0x11c   : > { %v752_v19 = vrot.slane %v751_v14, 2  ;;  %v2520_v21 = vpop.f32.mrb[20].mxu0 }
 0x11d   : > { %v3289_v26 = vadd.f32 %v2520_v21, %v3204_v3  ;;  %v1036_v28 = vpop.f32.mrb[21].mxu0 }
 0x11e   : > { %v753_v29 = vmax.f32 %v751_v14, %v752_v19  ;;  %v3295_v35 = vadd.f32 %v1036_v28, %v3196_v1  ;;  %v2521_v37 = vpop.f32.mrb[22].mxu0 }
 0x11f   : > { %v1087_v41 = vmax.f32 %v3286_v24, %v3289_v26  ;;  %v3303_v42 = vadd.f32 %v2521_v37, %v3206_v6  ;;  %v1039_v44 = vpop.f32.mrb[23].mxu0 }
 0x120   : > { %v754_v46 = vrot.slane %v753_v29, 1  ;;  %v1085_v50 = vmax.f32 %v3292_v34, %v3295_v35  ;;  %v3311_v52 = vadd.f32 %v1039_v44, %v3198_v2 }
 0x121   : > { %v1088_v55 = vmax.f32 %v3298_v39, %v3303_v42 }
 0x122   : > { %v755_v56 = vmax.f32 %v753_v29, %v754_v46  ;;  %v1086_v58 = vmax.f32 %v3306_v49, %v3311_v52 }
 0x124   : > { %v3322_v59 = vmax.f32 %v3313_v53, %v755_v56  ;;  %v2524_v4 = vpop.f32.mrb[24].mxu0 }
 0x125   : > { %v3325_v5 = vadd.f32 %v2524_v4, %v3232_v22  ;;  %v1052_v7 = vpop.f32.mrb[25].mxu0 }
 0x126   : > { %v3329_v8 = vrot.slane %v3322_v59, %v3317_v57  ;;  %897 = vst [vmem:[#allocation2] sm:$0x1] %v3322_v59  ;;  %v3333_v11 = vadd.f32 %v1052_v7, %v3208_v9  ;;  %v2525_v14 = vpop.f32.mrb[26].mxu0 }
 0x127   : > { %v1091_v17 = vmax.f32 %v1087_v41, %v3325_v5  ;;  %v3337_v19 = vadd.f32 %v2525_v14, %v3244_v27  ;;  %v1055_v21 = vpop.f32.mrb[27].mxu0 }
 0x128   : > { %v779_v28 = vsub.f32 %v723_v54, %v3329_v8  ;;  %v1089_v29 = vmax.f32 %v1085_v50, %v3333_v11  ;;  %v3342_v31 = vadd.f32 %v1055_v21, %v3210_v10  ;;  %v766_v37 = vsub.f32 %v3219_v15, %v3329_v8 }
 0x129   : > { %v1092_v44 = vmax.f32 %v1088_v55, %v3337_v19  ;;  %v767_v46 = vsub.f32 %v3235_v23, %v3329_v8  ;;  %v768_v41 = vsub.f32 %v3213_v12, %v3329_v8  ;;  %v769_v56 = vsub.f32 %v3225_v18, %v3329_v8 }
 0x12a   : > { %v808_v54 = vmul.f32 1.442695, %v779_v28  ;;  %v1090_v50 = vmax.f32 %v1086_v58, %v3342_v31  ;;  %v770_v4 = vsub.f32 %v3222_v16, %v3329_v8  ;;  %v771_v15 = vsub.f32 %v3240_v25, %v3329_v8 }
 0x12b   : > { %v772_v55 = vsub.f32 %v3216_v13, %v3329_v8  ;;  %v773_v23 = vsub.f32 %v3230_v20, %v3329_v8  ;;  %v774_v12 = vsub.f32 %v3254_v33, %v3329_v8  ;;  %v775_v18 = vsub.f32 %v3264_v40, %v3329_v8 }
 0x12c   : > { %2734 = vpow2.f32 %v808_v54  ;;  %v2528_v58 = vpop.f32.mrb[28].mxu0  ;;  %v776_v16 = vsub.f32 %v3249_v30, %v3329_v8  ;;  %v777_v25 = vsub.f32 %v3258_v36, %v3329_v8  ;;  %v778_v13 = vsub.f32 %v3276_v48, %v3329_v8 }
 0x12d   : > { %v3373_v7 = vadd.f32 %v2528_v58, %v3268_v43  ;;  %v1068_v20 = vpop.f32.mrb[29].mxu0  ;;  %v782_v14 = vmul.f32 1.442695, %v766_v37  ;;  %v784_v33 = vmul.f32 1.442695, %v767_v46  ;;  %v780_v40 = vsub.f32 %v3271_v45, %v3329_v8 }
 0x12e   : > { %v3378_v21 = vadd.f32 %v1068_v20, %v3251_v32  ;;  %v2529_v28 = vpop.f32.mrb[30].mxu0  ;;  %v786_v30 = vmul.f32 1.442695, %v768_v41  ;;  %v788_v54 = vmul.f32 1.442695, %v769_v56 }
 0x12f   : > { %v1095_v48 = vmax.f32 %v1091_v17, %v3373_v7  ;;  %v3384_v58 = vadd.f32 %v2529_v28, %v3273_v47  ;;  %v1071_v60 = vpop.f32.mrb[31].mxu0  ;;  %2736 = vpow2.f32 %v782_v14  ;;  %v790_v37 = vmul.f32 1.442695, %v770_v4 }
 0x130   : > { %v1093_v46 = vmax.f32 %v1089_v29, %v3378_v21  ;;  %v3388_v45 = vadd.f32 %v1071_v60, %v3260_v38  ;;  %2738 = vpow2.f32 %v784_v33  ;;  %v792_v20 = vmul.f32 1.442695, %v771_v15 }
 0x131   : > { %v1096_v41 = vmax.f32 %v1092_v44, %v3384_v58  ;;  %2740 = vpow2.f32 %v786_v30  ;;  %v794_v56 = vmul.f32 1.442695, %v772_v55  ;;  %v796_v17 = vmul.f32 1.442695, %v773_v23 }
 0x132   : > { %v1094_v36 = vmax.f32 %v1090_v50, %v3388_v45  ;;  %2742 = vpow2.f32 %v788_v54  ;;  %v798_v47 = vmul.f32 1.442695, %v774_v12  ;;  %v800_v29 = vmul.f32 1.442695, %v775_v18 }
 0x133   : > { %v1098_v28 = vmax.f32 %v1095_v48, %v1096_v41  ;;  %2744 = vpow2.f32 %v790_v37  ;;  %v802_v60 = vmul.f32 1.442695, %v776_v16  ;;  %v804_v55 = vmul.f32 1.442695, %v777_v25 }
 0x134   : > { %v1097_v14 = vmax.f32 %v1093_v46, %v1094_v36  ;;  %v2554_v4 = vpop.f32.mrb[32].mxu0  ;;  %2746 = vpow2.f32 %v792_v20  ;;  %v806_v50 = vmul.f32 1.442695, %v778_v13  ;;  %v810_v41 = vmul.f32 1.442695, %v780_v40 }
 0x135   : > { %v1372_v32 = vpop.f32.mrb[33].mxu0  ;;  %2748 = vpow2.f32 %v794_v56  ;;  %v3395_v25 = vadd.f32 %v2554_v4, %v3190_v62  ;;  %v3918_v40 = vmov 0.0  }
 0x136   : > { %v3392_v33 = vpop.eup %2734  ;;  %v1099_v15 = vmax.f32 %v1097_v14, %v1098_v28  ;;  %v2555_v44 = vpop.f32.mrb[34].mxu0  ;;  %2750 = vpow2.f32 %v796_v17 }
 0x137   : > { %v1375_v30 = vpop.f32.mrb[35].mxu0  ;;  %2752 = vpow2.f32 %v798_v47  ;;  %3915 = vst [vmem:[#allocation11_spill] sm:$0xff] %v3395_v25 }
 0x138   : > { %v1100_v23 = vrot.slane %v1099_v15, 4  ;;  %2754 = vpow2.f32 %v800_v29 }
 0x139   : > { %v2737_v54 = vpop.eup %2736  ;;  %2756 = vpow2.f32 %v802_v60  ;;  %v3401_v60 = vadd.f32 %v1372_v32, %v3188_v61 }
 0x13a   : > { %v2739_v12 = vpop.eup %2738  ;;  %v1101_v36 = vmax.f32 %v1099_v15, %v1100_v23  ;;  %2758 = vpow2.f32 %v804_v55  ;;  %v3404_v15 = vadd.f32 %v2555_v44, %v3194_v0  ;;  %v3416_v44 = vadd.f32 %v1375_v30, %v3192_v63 }
 0x13b   : > { %v2741_v18 = vpop.eup %2740  ;;  %2760 = vpow2.f32 %v806_v50  ;;  %v816_v48 = vadd.f32 %v2739_v12, %v2737_v54  ;;  %v839_v16 = vpack.c.bf16 %v2739_v12, %v2737_v54  ;;  %3917 = vst [vmem:[#allocation13_spill] sm:$0xff] %v3401_v60 }
 0x13c   : > { %v2743_v37 = vpop.eup %2742  ;;  %v1102_v46 = vrot.slane %v1101_v36, 2  ;;  %v2558_v20 = vpop.f32.mrb[36].mxu0  ;;  %2762 = vpow2.f32 %v810_v41 }
 0x13d   : > { %v2745_v56 = vpop.eup %2744  ;;  %v817_v47 = vadd.f32 %v2741_v18, %v816_v48  ;;  %2493 = vmatpush3.bf16.msra.mxu1 %v839_v16  ;;  %v3398_v13 = vadd.f32 %v2558_v20, %v3204_v3  ;;  %v840_v17 = vpack.c.bf16 %v2743_v37, %v2741_v18  ;;  %v1388_v28 = vpop.f32.mrb[37].mxu0  ;;  %v3423_v20 = vld [vmem:[#allocation2 + $0x1] sm:$0x1] }
 0x13e   : > { %v2747_v14 = vpop.eup %2746  ;;  %v1103_v29 = vmax.f32 %v1101_v36, %v1102_v46  ;;  %2494 = vmatprep.subr.bf16.mxu1 %v3918_v40  ;;  %v3408_v4 = vadd.f32 %v1388_v28, %v3196_v1  ;;  %v2559_v55 = vpop.f32.mrb[38].mxu0 }
 0x13f   : > { %3916 = vst [vmem:[#allocation12_spill] sm:$0xff] %v3398_v13  ;;  %v2749_v50 = vpop.eup %2748  ;;  %v818_v23 = vadd.f32 %v2743_v37, %v817_v47  ;;  %v1439_v54 = vmax.f32 %v3395_v25, %v3398_v13  ;;  %v3413_v12 = vadd.f32 %v2559_v55, %v3206_v6  ;;  %v1391_v36 = vpop.f32.mrb[39].mxu0  ;;  %v841_v32 = vpack.c.bf16 %v2747_v14, %v2745_v56 }
 0x140   : > { %3919 = vst [vmem:[#allocation14_spill] sm:$0xff] %v3408_v4  ;;  %v2751_v18 = vpop.eup %2750  ;;  %v1104_v48 = vrot.slane %v1103_v29, 1  ;;  %v1437_v16 = vmax.f32 %v3401_v60, %v3408_v4  ;;  %v3421_v46 = vadd.f32 %v1391_v36, %v3198_v2  ;;  %v3920_v13 = vsub.f32 %v3280_v51, %v3329_v8 }
 0x141   : > { %v2753_v37 = vpop.eup %2752  ;;  %v819_v47 = vadd.f32 %v2745_v56, %v818_v23  ;;  %2495 = vmatpush3.bf16.msra.mxu1 %v840_v17  ;;  %v842_v55 = vpack.c.bf16 %v2751_v18, %v2749_v50  ;;  %v757_v23 = vsub.f32 %v3313_v53, %v3322_v59 }
 0x142   : > { %v812_v30 = vmul.f32 1.442695, %v3920_v13  ;;  %v3430_v25 = vpop.eup %2754  ;;  %v1105_v6 = vmax.f32 %v1103_v29, %v1104_v48  ;;  %2496 = vmatprep.subr.bf16.mxu1 %v3918_v40 }
 0x143   : > { %v3435_v4 = vpop.eup %2756  ;;  %v820_v56 = vadd.f32 %v2747_v14, %v819_v47  ;;  %v843_v17 = vpack.c.bf16 %v3430_v25, %v2753_v37 }
 0x144   : > { %v3440_v28 = vpop.eup %2758  ;;  %v3443_v51 = vmax.f32 %v3423_v20, %v1105_v6  ;;  %v2562_v8 = vpop.f32.mrb[40].mxu0  ;;  %2764 = vpow2.f32 %v812_v30 }
 0x145   : > { %v3445_v13 = vpop.eup %2760  ;;  %v821_v29 = vadd.f32 %v2749_v50, %v820_v56  ;;  %2497 = vmatpush3.bf16.msra.mxu1 %v841_v32  ;;  %v3448_v48 = vadd.f32 %v2562_v8, %v3232_v22  ;;  %v1404_v14 = vpop.f32.mrb[41].mxu0  ;;  %v844_v47 = vpack.c.bf16 %v3440_v28, %v3435_v4  ;;  %v758_v56 = vmul.f32 1.442695, %v757_v23 }
 0x146   : > { %v3454_v53 = vrot.slane %v3443_v51, %v3317_v57  ;;  %1249 = vst [vmem:[#allocation2 + $0x1] sm:$0x1] %v3443_v51  ;;  %2498 = vmatprep.subr.bf16.mxu1 %v3918_v40  ;;  %v2563_v6 = vpop.f32.mrb[42].mxu0  ;;  %v3464_v32 = vadd.f32 %v1404_v14, %v3208_v9 }
 0x147   : > { %3921 = vst [vmem:[#allocation15_spill] sm:$0xff] %v3448_v48  ;;  %v822_v41 = vadd.f32 %v2751_v18, %v821_v29  ;;  %v3461_v50 = vmax.f32 %v1439_v54, %v3448_v48  ;;  %v1407_v30 = vpop.f32.mrb[43].mxu0  ;;  %v3503_v48 = vadd.f32 %v2563_v6, %v3244_v27  ;;  %2766 = vpow2.f32 %v758_v56 }
 0x148   : > { %v1116_v8 = vsub.f32 %v3292_v34, %v3454_v53  ;;  %v1117_v36 = vsub.f32 %v3306_v49, %v3454_v53  ;;  %v1118_v60 = vsub.f32 %v3286_v24, %v3454_v53  ;;  %v1119_v18 = vsub.f32 %v3298_v39, %v3454_v53 }
 0x149   : > { %v1120_v54 = vsub.f32 %v3295_v35, %v3454_v53  ;;  %v1121_v29 = vsub.f32 %v3311_v52, %v3454_v53  ;;  %v1122_v23 = vsub.f32 %v3289_v26, %v3454_v53  ;;  %v1123_v34 = vsub.f32 %v3303_v42, %v3454_v53  ;;  %2499 = vmatpush3.bf16.msra.mxu1 %v842_v55 }
 0x14a   : > { %v1124_v49 = vsub.f32 %v3333_v11, %v3454_v53  ;;  %v1125_v24 = vsub.f32 %v3342_v31, %v3454_v53  ;;  %v1126_v39 = vsub.f32 %v3325_v5, %v3454_v53  ;;  %v1127_v35 = vsub.f32 %v3337_v19, %v3454_v53  ;;  %2500 = vmatprep.subr.bf16.mxu1 %v3918_v40 }
 0x14b   : > { %v1128_v26 = vsub.f32 %v3378_v21, %v3454_v53  ;;  %v1129_v42 = vsub.f32 %v3388_v45, %v3454_v53  ;;  %v1130_v52 = vsub.f32 %v3373_v7, %v3454_v53  ;;  %v1132_v31 = vmul.f32 1.442695, %v1116_v8  ;;  %v3505_v21 = vpop.eup %2762 }
 0x14c   : > { %v1134_v55 = vmul.f32 1.442695, %v1117_v36  ;;  %v1136_v5 = vmul.f32 1.442695, %v1118_v60  ;;  %v823_v14 = vadd.f32 %v2753_v37, %v822_v41  ;;  %v1138_v59 = vmul.f32 1.442695, %v1119_v18 }
 0x14d   : > { %v3500_v19 = vmax.f32 %v1437_v16, %v3464_v32  ;;  %2501 = vmatpush3.bf16.msra.mxu1 %v843_v17  ;;  %2768 = vpow2.f32 %v1132_v31  ;;  %v1140_v45 = vmul.f32 1.442695, %v1120_v54  ;;  %v1142_v60 = vmul.f32 1.442695, %v1121_v29  ;;  %v2566_v18 = vpop.f32.mrb[44].mxu0 }
 0x14e   : > { %2502 = vmatprep.subr.bf16.mxu1 %v3918_v40  ;;  %v3508_v11 = vpop.eup %2764  ;;  %2770 = vpow2.f32 %v1134_v55  ;;  %v1144_v37 = vmul.f32 1.442695, %v1122_v23  ;;  %v1146_v36 = vmul.f32 1.442695, %v1123_v34  ;;  %v1148_v16 = vmul.f32 1.442695, %v1124_v49 }
 0x14f   : > { %2772 = vpow2.f32 %v1136_v5  ;;  %v1150_v41 = vmul.f32 1.442695, %v1125_v24  ;;  %v1152_v6 = vmul.f32 1.442695, %v1126_v39  ;;  %v824_v17 = vadd.f32 %v3430_v25, %v823_v14  ;;  %v1420_v23 = vpop.f32.mrb[45].mxu0  ;;  %v3923_v49 = vld [vmem:[#allocation9_spill] sm:$0xff] }
 0x150   : > { %2774 = vpow2.f32 %v1138_v59  ;;  %v3922_v56 = vmax.f32 %v3404_v15, %v3413_v12  ;;  %v3516_v54 = vadd.f32 %v1407_v30, %v3210_v10  ;;  %v3519_v29 = vadd.f32 %v2566_v18, %v3268_v43  ;;  %v3925_v55 = vld [vmem:[#allocation10_spill] sm:$0xff] }
 0x151   : > { %2503 = vmatpush3.bf16.msra.mxu1 %v844_v47  ;;  %2776 = vpow2.f32 %v1140_v45  ;;  %v846_v25 = vpack.c.bf16 %v3508_v11, %v3505_v21  ;;  %v1154_v59 = vmul.f32 1.442695, %v1127_v35  ;;  %v825_v34 = vadd.f32 %v3435_v4, %v824_v17  ;;  %v2567_v47 = vpop.f32.mrb[46].mxu0 }
 0x152   : > { %v1444_v8 = vmax.f32 %v3922_v56, %v3503_v48  ;;  %2504 = vmatprep.subr.bf16.mxu1 %v3918_v40  ;;  %2778 = vpow2.f32 %v1142_v60  ;;  %v3526_v24 = vadd.f32 %v1420_v23, %v3923_v49  ;;  %v3924_v30 = vmax.f32 %v3416_v44, %v3421_v46  ;;  %v1423_v35 = vpop.f32.mrb[47].mxu0 }
 0x153   : > { %2780 = vpow2.f32 %v1144_v37  ;;  %v1447_v31 = vmax.f32 %v3461_v50, %v3519_v29  ;;  %v3535_v5 = vadd.f32 %v2567_v47, %v3925_v55  ;;  %v826_v4 = vadd.f32 %v3440_v28, %v825_v34  ;;  %v3555_v28 = vpop.eup %2766 }
 0x154   : > { %v1442_v39 = vmax.f32 %v3924_v30, %v3516_v54  ;;  %2782 = vpow2.f32 %v1146_v36  ;;  %v1445_v14 = vmax.f32 %v3500_v19, %v3526_v24  ;;  %v3541_v45 = vadd.f32 %v1423_v35, %v3260_v38  ;;  %v2592_v37 = vpop.f32.mrb[48].mxu0 }
 0x155   : > { %v3926_v60 = vpack.c.bf16 %v3392_v33, %v3445_v13  ;;  %2784 = vpow2.f32 %v1148_v16  ;;  %v1156_v50 = vmul.f32 1.442695, %v1128_v26  ;;  %v1448_v17 = vmax.f32 %v1444_v8, %v3535_v5  ;;  %v1724_v36 = vpop.f32.mrb[49].mxu0 }
 0x156   : > { %2786 = vpow2.f32 %v1150_v41  ;;  %v1158_v19 = vmul.f32 1.442695, %v1129_v42  ;;  %v827_v56 = vadd.f32 %v3445_v13, %v826_v4  ;;  %v1446_v26 = vmax.f32 %v1442_v39, %v3541_v45  ;;  %v2593_v16 = vpop.f32.mrb[50].mxu0  ;;  %v487_v39 = vld [vmem:[%s3553_s23] sm:$0xf] }
 0x157   : > { %2505 = vmatpush3.bf16.msra.mxu1 %v3926_v60  ;;  %v2769_v8 = vpop.eup %2768  ;;  %2788 = vpow2.f32 %v1152_v6  ;;  %v1160_v18 = vmul.f32 1.442695, %v1130_v52  ;;  %v1450_v23 = vmax.f32 %v1447_v31, %v1448_v17  ;;  %v1727_v34 = vpop.f32.mrb[51].mxu0  ;;  %v3927_v41 = vsub.f32 %v3384_v58, %v3454_v53 }
 0x158   : > { %2506 = vmatprep.subr.bf16.mxu1 %v3918_v40  ;;  %v2771_v47 = vpop.eup %2770  ;;  %2790 = vpow2.f32 %v1154_v59  ;;  %v828_v42 = vadd.f32 %v3392_v33, %v827_v56  ;;  %v1449_v13 = vmax.f32 %v1445_v14, %v1446_v26  ;;  %v3568_v4 = vadd.f32 %v2592_v37, %v3190_v62 }
 0x159   : > { %v1162_v30 = vmul.f32 1.442695, %v3927_v41  ;;  %v2773_v35 = vpop.eup %2772  ;;  %2792 = vpow2.f32 %v1156_v50  ;;  %v1167_v6 = vadd.f32 %v2771_v47, %v2769_v8  ;;  %v1190_v7 = vpack.c.bf16 %v2771_v47, %v2769_v8 }
 0x15a   : > { %v2775_v52 = vpop.eup %2774  ;;  %2794 = vpow2.f32 %v1158_v19  ;;  %v1451_v59 = vmax.f32 %v1449_v13, %v1450_v23  ;;  %v829_v58 = vadd.f32 %v3505_v21, %v828_v42  ;;  %v3573_v53 = vadd.f32 %v1724_v36, %v3188_v61 }
 0x15b   : > { %2507 = vmatpush3.bf16.msra.mxu1 %v846_v25  ;;  %v2777_v33 = vpop.eup %2776  ;;  %2796 = vpow2.f32 %v1160_v18  ;;  %v1168_v25 = vadd.f32 %v2773_v35, %v1167_v6  ;;  %v3576_v31 = vadd.f32 %v2593_v16, %v3194_v0  ;;  %v1191_v14 = vpack.c.bf16 %v2775_v52, %v2773_v35  ;;  %v3928_v18 = vld [vmem:[#allocation8_spill] sm:$0xff] }
 0x15c   : > { %2530 = vmatprep.subr.bf16.mxu1 %v3918_v40  ;;  %v2596_v62 = vpop.f32.mrb[52].mxu0  ;;  %v2779_v60 = vpop.eup %2778  ;;  %2798 = vpow2.f32 %v1162_v30  ;;  %v1452_v37 = vrot.slane %v1451_v59, 4  ;;  %v830_v50 = vadd.f32 %v3508_v11, %v829_v58  ;;  %v3585_v0 = vadd.f32 %v1727_v34, %v3192_v63 }
 0x15d   : > { %v3580_v21 = vadd.f32 %v2596_v62, %v3204_v3  ;;  %v1740_v61 = vpop.f32.mrb[53].mxu0  ;;  %v2781_v17 = vpop.eup %2780  ;;  %v1169_v36 = vadd.f32 %v2775_v52, %v1168_v25  ;;  %v1192_v11 = vpack.c.bf16 %v2779_v60, %v2777_v33 }
 0x15e   : > { %2509 = vmatmul.mubr.bf16.vlgmr.msra.gmra.mrb[0].mxu1 %v487_v39  ;;  %v3589_v19 = vadd.f32 %v1740_v61, %v3196_v1  ;;  %v2597_v56 = vpop.f32.mrb[54].mxu0  ;;  %v2783_v26 = vpop.eup %2782  ;;  %v1453_v16 = vmax.f32 %v1451_v59, %v1452_v37  ;;  %v831_v3 = vrot.slane %v830_v50, 4 }
 0x15f   : > { %2531 = vmatpush3.bf16.msra.mxu1 %v1190_v7  ;;  %2546 = vmatprep.mubr.msk.bf16.mxu1 %vm2961_vm2, %v3918_v40  ;;  %v1791_v8 = vmax.f32 %v3568_v4, %v3580_v21  ;;  %v3594_v23 = vadd.f32 %v2597_v56, %v3928_v18  ;;  %v1743_v47 = vpop.f32.mrb[55].mxu0  ;;  %v3596_v41 = vpop.eup %2784  ;;  %v1170_v63 = vadd.f32 %v2777_v33, %v1169_v36  ;;  %v3624_v18 = vld [vmem:[#allocation2 + $0x2] sm:$0x1] }
 0x160   : > { %2532 = vmatprep.subr.bf16.mxu1 %v3918_v40  ;;  %v1789_v34 = vmax.f32 %v3573_v53, %v3589_v19  ;;  %v3601_v1 = vadd.f32 %v1743_v47, %v3198_v2  ;;  %v1193_v30 = vpack.c.bf16 %v2783_v26, %v2781_v17  ;;  %v2787_v42 = vpop.eup %2786  ;;  %v1454_v13 = vrot.slane %v1453_v16, 2 }
 0x161   : > { %v832_v39 = vadd.f32 %v831_v3, %v830_v50  ;;  %v1792_v35 = vmax.f32 %v3576_v31, %v3594_v23  ;;  %v3605_v6 = vpop.eup %2788  ;;  %v1171_v7 = vadd.f32 %v2779_v60, %v1170_v63  ;;  %v1194_v59 = vpack.c.bf16 %v2787_v42, %v3596_v41 }
 0x162   : > { %v1790_v52 = vmax.f32 %v3585_v0, %v3601_v1  ;;  %v3611_v2 = vpop.eup %2790  ;;  %v1455_v58 = vmax.f32 %v1453_v16, %v1454_v13  ;;  %v814_v13 = vld [vmem:[#allocation3] sm:$0x1] }
 0x163   : > { %2533 = vmatpush3.bf16.msra.mxu1 %v1191_v14  ;;  %v833_v33 = vrot.slane %v832_v39, 2  ;;  %v3613_v25 = vpop.eup %2792  ;;  %v1172_v62 = vadd.f32 %v2781_v17, %v1171_v7  ;;  %v1195_v37 = vpack.c.bf16 %v3611_v2, %v3605_v6 }
 0x164   : > { %2534 = vmatprep.subr.bf16.mxu1 %v3918_v40  ;;  %v2600_v14 = vpop.f32.mrb[56].mxu0  ;;  %v3617_v50 = vpop.eup %2794  ;;  %v1456_v60 = vrot.slane %v1455_v58, 1 }
 0x165   : > { %v834_v61 = vadd.f32 %v833_v33, %v832_v39  ;;  %v3620_v36 = vadd.f32 %v2600_v14, %v3232_v22  ;;  %v1756_v56 = vpop.f32.mrb[57].mxu0  ;;  %v3622_v3 = vpop.eup %2796  ;;  %v1173_v16 = vadd.f32 %v2783_v26, %v1172_v62  ;;  %v1107_v22 = vsub.f32 %v3423_v20, %v3443_v51 }
 0x166   : > { %v3628_v17 = vadd.f32 %v1756_v56, %v3208_v9  ;;  %v2601_v47 = vpop.f32.mrb[58].mxu0  ;;  %v1457_v39 = vmax.f32 %v1455_v58, %v1456_v60  ;;  %v815_v58 = vmul.f32 %v3555_v28, %v814_v13 }
 0x167   : > { %2535 = vmatpush3.bf16.msra.mxu1 %v1192_v11  ;;  %v3634_v11 = vpop.eup %2798  ;;  %v835_v7 = vrot.slane %v834_v61, 1  ;;  %v3637_v26 = vmax.f32 %v1791_v8, %v3620_v36  ;;  %v3640_v33 = vadd.f32 %v2601_v47, %v3244_v27  ;;  %v1759_v9 = vpop.f32.mrb[59].mxu0  ;;  %v1174_v62 = vadd.f32 %v3596_v41, %v1173_v16  ;;  %v3929_v16 = vld [vmem:[#allocation13_spill] sm:$0xff] }
 0x168   : > { %2536 = vmatprep.subr.bf16.mxu1 %v3918_v40  ;;  %v3644_v14 = vmax.f32 %v1789_v34, %v3628_v17  ;;  %v3647_v56 = vadd.f32 %v1759_v9, %v3210_v10  ;;  %v3652_v51 = vmax.f32 %v3624_v18, %v1457_v39 }
 0x169   : > { %v836_v8 = vadd.f32 %v835_v7, %v834_v61  ;;  %v3655_v27 = vmax.f32 %v1792_v35, %v3640_v33  ;;  %v1175_v41 = vadd.f32 %v2787_v42, %v1174_v62  ;;  %v1108_v35 = vmul.f32 1.442695, %v1107_v22  ;;  %v3931_v62 = vld [vmem:[#allocation14_spill] sm:$0xff] }
 0x16a   : > { %v3659_v34 = vmax.f32 %v1790_v52, %v3647_v56  ;;  %v3664_v10 = vrot.slane %v3652_v51, %v3317_v57  ;;  %1601 = vst [vmem:[#allocation2 + $0x2] sm:$0x1] %v3652_v51  ;;  %v3930_v52 = vld [vmem:[#allocation11_spill] sm:$0xff] }
 0x16b   : > { %2537 = vmatpush3.bf16.msra.mxu1 %v1193_v30  ;;  %v837_v60 = vadd.f32 %v836_v8, %v815_v58  ;;  %v1176_v30 = vadd.f32 %v3605_v6, %v1175_v41  ;;  %v3932_v58 = vld [vmem:[#allocation12_spill] sm:$0xff]  ;;  %2800 = vpow2.f32 %v1108_v35  ;;  %v3934_v6 = vpack.c.bf16 %v3617_v50, %v3613_v25 }
 0x16c   : > { %2538 = vmatprep.subr.bf16.mxu1 %v3918_v40  ;;  %v2604_v61 = vpop.f32.mrb[60].mxu0  ;;  %v1468_v47 = vsub.f32 %v3929_v16, %v3664_v10  ;;  %v1469_v42 = vsub.f32 %v3416_v44, %v3664_v10  ;;  %v1470_v13 = vsub.f32 %v3930_v52, %v3664_v10  ;;  %v1471_v39 = vsub.f32 %v3404_v15, %v3664_v10 }
 0x16d   : > { %v1772_v7 = vpop.f32.mrb[61].mxu0  ;;  %838 = vst [vmem:[#allocation3] sm:$0x1] %v837_v60  ;;  %v1177_v9 = vadd.f32 %v3611_v2, %v1176_v30  ;;  %v1472_v22 = vsub.f32 %v3931_v62, %v3664_v10  ;;  %v1473_v8 = vsub.f32 %v3421_v46, %v3664_v10  ;;  %v1474_v44 = vsub.f32 %v3932_v58, %v3664_v10  ;;  %v3933_v30 = vld [vmem:[#allocation15_spill] sm:$0xff] }
 0x16e   : > { %v2605_v41 = vpop.f32.mrb[62].mxu0  ;;  %v1475_v15 = vsub.f32 %v3413_v12, %v3664_v10  ;;  %v1477_v60 = vsub.f32 %v3516_v54, %v3664_v10  ;;  %v1478_v16 = vsub.f32 %v3933_v30, %v3664_v10  ;;  %v1479_v62 = vsub.f32 %v3503_v48, %v3664_v10 }
 0x16f   : > { %2539 = vmatpush3.bf16.msra.mxu1 %v1194_v59  ;;  %v1476_v59 = vsub.f32 %v3464_v32, %v3664_v10  ;;  %v1775_v52 = vpop.f32.mrb[63].mxu0  ;;  %v1178_v46 = vadd.f32 %v3613_v25, %v1177_v9  ;;  %v1480_v58 = vsub.f32 %v3526_v24, %v3664_v10  ;;  %v1481_v12 = vsub.f32 %v3541_v45, %v3664_v10 }
 0x170   : > { %2540 = vmatprep.subr.bf16.mxu1 %v3918_v40  ;;  %v1482_v32 = vsub.f32 %v3519_v29, %v3664_v10  ;;  %v1483_v54 = vsub.f32 %v3535_v5, %v3664_v10  ;;  %v1484_v20 = vmul.f32 1.442695, %v1468_v47  ;;  %v1486_v30 = vmul.f32 1.442695, %v1469_v42 }
 0x171   : > { %v1179_v48 = vadd.f32 %v3617_v50, %v1178_v46  ;;  %v1488_v9 = vmul.f32 1.442695, %v1470_v13  ;;  %v1490_v63 = vmul.f32 1.442695, %v1471_v39  ;;  %v1492_v24 = vmul.f32 1.442695, %v1472_v22 }
 0x172   : > { %2802 = vpow2.f32 %v1484_v20  ;;  %v1494_v45 = vmul.f32 1.442695, %v1473_v8  ;;  %v1496_v5 = vmul.f32 1.442695, %v1474_v44  ;;  %v1498_v10 = vmul.f32 1.442695, %v1475_v15 }
 0x173   : > { %2541 = vmatpush3.bf16.msra.mxu1 %v1195_v37  ;;  %v1180_v29 = vadd.f32 %v3622_v3, %v1179_v48  ;;  %2804 = vpow2.f32 %v1486_v30  ;;  %v1500_v37 = vmul.f32 1.442695, %v1476_v59  ;;  %v1502_v47 = vmul.f32 1.442695, %v1477_v60  ;;  %v1165_v46 = vld [vmem:[#allocation3 + $0x1] sm:$0x1] }
 0x174   : > { %2542 = vmatprep.subr.bf16.mxu1 %v3918_v40  ;;  %2806 = vpow2.f32 %v1488_v9  ;;  %v1504_v20 = vmul.f32 1.442695, %v1478_v16  ;;  %v3715_v35 = vadd.f32 %v2604_v61, %v3268_v43  ;;  %v3718_v42 = vadd.f32 %v1772_v7, %v3923_v49  ;;  %v2297_v61 = vld [vmem:[%s3553_s23 + $0x4] sm:$0xf] }
 0x175   : > { %v1181_v2 = vadd.f32 %v3634_v11, %v1180_v29  ;;  %2808 = vpow2.f32 %v1490_v63  ;;  %v3721_v25 = vadd.f32 %v2605_v41, %v3925_v55  ;;  %v3724_v50 = vadd.f32 %v1775_v52, %v3260_v38  ;;  %v3739_v8 = vpop.eup %2800 }
 0x176   : > { %2810 = vpow2.f32 %v1492_v24  ;;  %v1506_v63 = vmul.f32 1.442695, %v1479_v62  ;;  %v1799_v39 = vmax.f32 %v3637_v26, %v3715_v35  ;;  %v1797_v43 = vmax.f32 %v3644_v14, %v3718_v42 }
 0x177   : > { %2543 = vmatpush3.bf16.msra.mxu1 %v3934_v6  ;;  %v1182_v13 = vrot.slane %v1181_v2, 4  ;;  %2812 = vpow2.f32 %v1494_v45  ;;  %v3935_v49 = vpack.c.bf16 %v3634_v11, %v3622_v3  ;;  %v1800_v55 = vmax.f32 %v3655_v27, %v3721_v25 }
 0x178   : > { %2544 = vmatprep.subr.bf16.mxu1 %v3918_v40  ;;  %2814 = vpow2.f32 %v1496_v5  ;;  %v1798_v38 = vmax.f32 %v3659_v34, %v3724_v50  ;;  %v1508_v26 = vmul.f32 1.442695, %v1480_v58  ;;  %v1510_v22 = vmul.f32 1.442695, %v1481_v12 }
 0x179   : > { %v1183_v7 = vadd.f32 %v1182_v13, %v1181_v2  ;;  %2816 = vpow2.f32 %v1498_v10  ;;  %v1802_v3 = vmax.f32 %v1799_v39, %v1800_v55  ;;  %v1512_v41 = vmul.f32 1.442695, %v1482_v32 }
 0x17a   : > { %2818 = vpow2.f32 %v1500_v37  ;;  %v1801_v11 = vmax.f32 %v1797_v43, %v1798_v38  ;;  %v1514_v15 = vmul.f32 1.442695, %v1483_v54  ;;  %v1166_v54 = vmul.f32 %v3739_v8, %v1165_v46 }
 0x17b   : > { %2545 = vmatpush3.bf16.msra.mxu1 %v3935_v49  ;;  %v1184_v14 = vrot.slane %v1183_v7, 2  ;;  %2820 = vpow2.f32 %v1502_v47 }
 0x17c   : > { %2568 = vmatprep.subr.bf16.mxu1 %v3918_v40  ;;  %v2803_v44 = vpop.eup %2802  ;;  %2822 = vpow2.f32 %v1504_v20  ;;  %v1803_v59 = vmax.f32 %v1801_v11, %v1802_v3 }
 0x17d   : > { %v2805_v27 = vpop.eup %2804  ;;  %v1185_v34 = vadd.f32 %v1184_v14, %v1183_v7  ;;  %2824 = vpow2.f32 %v1506_v63 }
 0x17e   : > { %2547 = vmatmul.mubr.bf16.vlgmr.msra.gmra.mrb[4].mxu1 %v2297_v61  ;;  %v2807_v60 = vpop.eup %2806  ;;  %2826 = vpow2.f32 %v1508_v26  ;;  %v1519_v16 = vadd.f32 %v2805_v27, %v2803_v44  ;;  %v1542_v52 = vpack.c.bf16 %v2805_v27, %v2803_v44  ;;  %v1804_v12 = vrot.slane %v1803_v59, 4 }
 0x17f   : > { %2584 = vmatprep.mubr.msk.bf16.mxu1 %vm2961_vm2, %v3918_v40  ;;  %v2809_v62 = vpop.eup %2808  ;;  %v1186_v58 = vrot.slane %v1185_v34, 1  ;;  %2828 = vpow2.f32 %v1510_v22  ;;  %v3746_v22 = vld [vmem:[#allocation2 + $0x3] sm:$0x1] }
 0x180   : > { %v2811_v30 = vpop.eup %2810  ;;  %2830 = vpow2.f32 %v1512_v41  ;;  %v1520_v32 = vadd.f32 %v2807_v60, %v1519_v16  ;;  %2569 = vmatpush3.bf16.msra.mxu1 %v1542_v52  ;;  %v1543_v48 = vpack.c.bf16 %v2809_v62, %v2807_v60  ;;  %v1805_v29 = vmax.f32 %v1803_v59, %v1804_v12 }
 0x181   : > { %v2813_v9 = vpop.eup %2812  ;;  %v1187_v24 = vadd.f32 %v1186_v58, %v1185_v34  ;;  %2832 = vpow2.f32 %v1514_v15  ;;  %2570 = vmatprep.subr.bf16.mxu1 %v3918_v40  ;;  %v1459_v34 = vsub.f32 %v3624_v18, %v3652_v51 }
 0x182   : > { %v2815_v45 = vpop.eup %2814  ;;  %v1521_v5 = vadd.f32 %v2809_v62, %v1520_v32  ;;  %v1544_v10 = vpack.c.bf16 %v2813_v9, %v2811_v30  ;;  %v1806_v2 = vrot.slane %v1805_v29, 2 }
 0x183   : > { %v2817_v6 = vpop.eup %2816  ;;  %v1188_v37 = vadd.f32 %v1187_v24, %v1166_v54  ;;  %v1460_v62 = vmul.f32 1.442695, %v1459_v34 }
 0x184   : > { %v2819_v47 = vpop.eup %2818  ;;  %v1522_v20 = vadd.f32 %v2811_v30, %v1521_v5  ;;  %2571 = vmatpush3.bf16.msra.mxu1 %v1543_v48  ;;  %v1545_v13 = vpack.c.bf16 %v2817_v6, %v2815_v45  ;;  %v1807_v39 = vmax.f32 %v1805_v29, %v1806_v2 }
 0x185   : > { %v2821_v63 = vpop.eup %2820  ;;  %2572 = vmatprep.subr.bf16.mxu1 %v3918_v40  ;;  %1189 = vst [vmem:[#allocation3 + $0x1] sm:$0x1] %v1188_v37  ;;  %2834 = vpow2.f32 %v1460_v62 }
 0x186   : > { %v2823_v43 = vpop.eup %2822  ;;  %v1523_v49 = vadd.f32 %v2813_v9, %v1522_v20  ;;  %v1546_v61 = vpack.c.bf16 %v2821_v63, %v2819_v47  ;;  %v1808_v55 = vrot.slane %v1807_v39, 1 }
 0x187   : > { %v2825_v7 = vpop.eup %2824 }
 0x188   : > { %v2827_v38 = vpop.eup %2826  ;;  %v1524_v26 = vadd.f32 %v2815_v45, %v1523_v49  ;;  %2573 = vmatpush3.bf16.msra.mxu1 %v1544_v10  ;;  %v1547_v14 = vpack.c.bf16 %v2825_v7, %v2823_v43  ;;  %v1809_v11 = vmax.f32 %v1807_v39, %v1808_v55 }
 0x189   : > { %v2829_v3 = vpop.eup %2828  ;;  %2574 = vmatprep.subr.bf16.mxu1 %v3918_v40 }
 0x18a   : > { %v3749_v44 = vpop.eup %2830  ;;  %v1525_v41 = vadd.f32 %v2817_v6, %v1524_v26  ;;  %v1548_v27 = vpack.c.bf16 %v2829_v3, %v2827_v38  ;;  %v3754_v59 = vmax.f32 %v3746_v22, %v1809_v11 }
 0x18b   : > { %v2833_v15 = vpop.eup %2832 }
 0x18c   : > { %v1526_v60 = vadd.f32 %v2819_v47, %v1525_v41  ;;  %2575 = vmatpush3.bf16.msra.mxu1 %v1545_v13  ;;  %v1549_v16 = vpack.c.bf16 %v2833_v15, %v3749_v44  ;;  %v3759_v52 = vrot.slane %v3754_v59, %v3317_v57  ;;  %1953 = vst [vmem:[#allocation2 + $0x3] sm:$0x1] %v3754_v59  ;;  %v2331_v13 = vld [vmem:[%s3553_s23 + $0x8] sm:$0xf] }
 0x18d   : > { %2576 = vmatprep.subr.bf16.mxu1 %v3918_v40 }
 0x18e   : > { %v1527_v46 = vadd.f32 %v2821_v63, %v1526_v60  ;;  %v1820_v18 = vsub.f32 %v3573_v53, %v3759_v52  ;;  %v1821_v51 = vsub.f32 %v3585_v0, %v3759_v52  ;;  %v1822_v58 = vsub.f32 %v3568_v4, %v3759_v52  ;;  %v1517_v60 = vld [vmem:[#allocation3 + $0x2] sm:$0x1] }
 0x18f   : > { %v1823_v12 = vsub.f32 %v3576_v31, %v3759_v52  ;;  %v1824_v32 = vsub.f32 %v3589_v19, %v3759_v52  ;;  %v1825_v48 = vsub.f32 %v3601_v1, %v3759_v52  ;;  %v1826_v9 = vsub.f32 %v3580_v21, %v3759_v52  ;;  %v3801_v39 = vpop.eup %2834 }
 0x190   : > { %v1528_v30 = vadd.f32 %v2823_v43, %v1527_v46  ;;  %2577 = vmatpush3.bf16.msra.mxu1 %v1546_v61  ;;  %v1827_v53 = vsub.f32 %v3594_v23, %v3759_v52  ;;  %v1828_v4 = vsub.f32 %v3628_v17, %v3759_v52  ;;  %v1829_v31 = vsub.f32 %v3647_v56, %v3759_v52 }
 0x191   : > { %v1830_v0 = vsub.f32 %v3620_v36, %v3759_v52  ;;  %2578 = vmatprep.subr.bf16.mxu1 %v3918_v40  ;;  %v1831_v1 = vsub.f32 %v3640_v33, %v3759_v52  ;;  %v1832_v21 = vsub.f32 %v3718_v42, %v3759_v52  ;;  %v1833_v23 = vsub.f32 %v3724_v50, %v3759_v52 }
 0x192   : > { %v1529_v19 = vadd.f32 %v2825_v7, %v1528_v30  ;;  %v1834_v17 = vsub.f32 %v3715_v35, %v3759_v52  ;;  %v1835_v56 = vsub.f32 %v3721_v25, %v3759_v52  ;;  %v1836_v24 = vmul.f32 1.442695, %v1820_v18 }
 0x193   : > { %v1838_v36 = vmul.f32 1.442695, %v1821_v51  ;;  %v1840_v54 = vmul.f32 1.442695, %v1822_v58  ;;  %v1842_v45 = vmul.f32 1.442695, %v1823_v12  ;;  %v1518_v12 = vmul.f32 %v3801_v39, %v1517_v60 }
 0x194   : > { %v1530_v29 = vadd.f32 %v2827_v38, %v1529_v19  ;;  %2579 = vmatpush3.bf16.msra.mxu1 %v1547_v14  ;;  %2836 = vpow2.f32 %v1836_v24  ;;  %v1844_v33 = vmul.f32 1.442695, %v1824_v32  ;;  %v1846_v50 = vmul.f32 1.442695, %v1825_v48 }
 0x195   : > { %2580 = vmatprep.subr.bf16.mxu1 %v3918_v40  ;;  %2838 = vpow2.f32 %v1838_v36  ;;  %v1848_v5 = vmul.f32 1.442695, %v1826_v9  ;;  %v1850_v25 = vmul.f32 1.442695, %v1827_v53  ;;  %v1852_v10 = vmul.f32 1.442695, %v1828_v4 }
 0x196   : > { %v1531_v42 = vadd.f32 %v2829_v3, %v1530_v29  ;;  %2840 = vpow2.f32 %v1840_v54  ;;  %v1854_v2 = vmul.f32 1.442695, %v1829_v31  ;;  %v1856_v37 = vmul.f32 1.442695, %v1830_v0 }
 0x197   : > { %2842 = vpow2.f32 %v1842_v45  ;;  %v1858_v20 = vmul.f32 1.442695, %v1831_v1  ;;  %v1860_v63 = vmul.f32 1.442695, %v1832_v21  ;;  %v1862_v49 = vmul.f32 1.442695, %v1833_v23 }
 0x198   : > { %v1532_v35 = vadd.f32 %v3749_v44, %v1531_v42  ;;  %2581 = vmatpush3.bf16.msra.mxu1 %v1548_v27  ;;  %2844 = vpow2.f32 %v1844_v33  ;;  %v1864_v7 = vmul.f32 1.442695, %v1834_v17  ;;  %v1866_v26 = vmul.f32 1.442695, %v1835_v56 }
 0x199   : > { %2582 = vmatprep.subr.bf16.mxu1 %v3918_v40  ;;  %2846 = vpow2.f32 %v1846_v50  ;;  %v1811_v50 = vsub.f32 %v3746_v22, %v3754_v59 }
 0x19a   : > { %v1533_v6 = vadd.f32 %v2833_v15, %v1532_v35  ;;  %2848 = vpow2.f32 %v1848_v5 }
 0x19b   : > { %2850 = vpow2.f32 %v1850_v25  ;;  %v1812_v25 = vmul.f32 1.442695, %v1811_v50 }
 0x19c   : > { %v1534_v47 = vrot.slane %v1533_v6, 4  ;;  %2583 = vmatpush3.bf16.msra.mxu1 %v1549_v16  ;;  %2852 = vpow2.f32 %v1852_v10 }
 0x19d   : > { %2606 = vmatprep.subr.bf16.mxu1 %v3918_v40  ;;  %2854 = vpow2.f32 %v1854_v2 }
 0x19e   : > { %v1535_v43 = vadd.f32 %v1534_v47, %v1533_v6  ;;  %v2837_v61 = vpop.eup %2836  ;;  %2856 = vpow2.f32 %v1856_v37  ;;  %v2365_v47 = vld [vmem:[%s3553_s23 + $0xc] sm:$0xf]  ;;  %s3842_s23 = scalar_lea.hbm %s3897_s7, %s2398_s20 }
 0x19f   : > { %2585 = vmatmul.mubr.bf16.vlgmr.msra.gmra.mrb[8].mxu1 %v2331_v13  ;;  %v2839_v55 = vpop.eup %2838  ;;  %2858 = vpow2.f32 %v1858_v20 }
 0x1a0   : > { %v1536_v38 = vrot.slane %v1535_v43, 2  ;;  %2622 = vmatprep.mubr.msk.bf16.mxu1 %vm2961_vm2, %v3918_v40  ;;  %v2841_v14 = vpop.eup %2840  ;;  %2860 = vpow2.f32 %v1860_v63  ;;  %v1871_v3 = vadd.f32 %v2839_v55, %v2837_v61  ;;  %v1894_v11 = vpack.c.bf16 %v2839_v55, %v2837_v61  ;;  %v1869_v63 = vld [vmem:[#allocation3 + $0x3] sm:$0x1] }
 0x1a1   : > { %v2843_v44 = vpop.eup %2842  ;;  %2862 = vpow2.f32 %v1862_v49  ;;  %v892_v55 = vrot.slane %v3555_v28, %v3317_v57 }
 0x1a2   : > { %v1537_v41 = vadd.f32 %v1536_v38, %v1535_v43  ;;  %v2845_v27 = vpop.eup %2844  ;;  %2864 = vpow2.f32 %v1864_v7  ;;  %v1872_v34 = vadd.f32 %v2841_v14, %v1871_v3  ;;  %2607 = vmatpush3.bf16.msra.mxu1 %v1894_v11  ;;  %v1895_v15 = vpack.c.bf16 %v2843_v44, %v2841_v14 }
 0x1a3   : > { %v2847_v16 = vpop.eup %2846  ;;  %2866 = vpow2.f32 %v1866_v26  ;;  %2608 = vmatprep.subr.bf16.mxu1 %v3918_v40  ;;  %v894_v38 = vmul.f32 0.0, %v892_v55 }
 0x1a4   : > { %v1538_v52 = vrot.slane %v1537_v41, 1  ;;  %v2849_v46 = vpop.eup %2848  ;;  %v1873_v62 = vadd.f32 %v2843_v44, %v1872_v34  ;;  %v1896_v18 = vpack.c.bf16 %v2847_v16, %v2845_v27  ;;  %2868 = vpow2.f32 %v1812_v25  ;;  %v2386_v25 = vld [vmem:[%s436_s18] ss:$0 sm:$0xff] }
 0x1a5   : > { %v2851_v51 = vpop.eup %2850  ;;  %v1244_v34 = vrot.slane %v3739_v8, %v3317_v57  ;;  %v1596_v8 = vrot.slane %v3801_v39, %v3317_v57 }
 0x1a6   : > { %v1539_v58 = vadd.f32 %v1538_v52, %v1537_v41  ;;  %v2853_v30 = vpop.eup %2852  ;;  %v1874_v32 = vadd.f32 %v2845_v27, %v1873_v62  ;;  %2609 = vmatpush3.bf16.msra.mxu1 %v1895_v15  ;;  %v1897_v48 = vpack.c.bf16 %v2851_v51, %v2849_v46  ;;  %v1957_v41 = vld [vmem:[#allocation3] sm:$0x1]  ;;  %v1958_v27 = vld [vmem:[#allocation3 + $0x1] sm:$0x1] }
 0x1a7   : > { %v2855_v9 = vpop.eup %2854  ;;  %2610 = vmatprep.subr.bf16.mxu1 %v3918_v40  ;;  %2870 = vrcp.f32 %v1957_v41 }
 0x1a8   : > { %v1540_v53 = vadd.f32 %v1539_v58, %v1518_v12  ;;  %v2857_v4 = vpop.eup %2856  ;;  %v1875_v31 = vadd.f32 %v2847_v16, %v1874_v32  ;;  %v1898_v0 = vpack.c.bf16 %v2855_v9, %v2853_v30  ;;  %2872 = vrcp.f32 %v1958_v27 }
 0x1a9   : > { %v2859_v19 = vpop.eup %2858  ;;  %v1246_v16 = vmul.f32 0.0, %v1244_v34 }
 0x1aa   : > { %1541 = vst [vmem:[#allocation3 + $0x2] sm:$0x1] %v1540_v53  ;;  %v2861_v1 = vpop.eup %2860  ;;  %v1876_v21 = vadd.f32 %v2849_v46, %v1875_v31  ;;  %2611 = vmatpush3.bf16.msra.mxu1 %v1896_v18  ;;  %v1899_v23 = vpack.c.bf16 %v2859_v19, %v2857_v4 }
 0x1ab   : > { %v2863_v17 = vpop.eup %2862  ;;  %2612 = vmatprep.subr.bf16.mxu1 %v3918_v40 }
 0x1ac   : > { %v2865_v56 = vpop.eup %2864  ;;  %v1877_v24 = vadd.f32 %v2851_v51, %v1876_v21  ;;  %v1900_v36 = vpack.c.bf16 %v2863_v17, %v2861_v1 }
 0x1ad   : > { %v2867_v29 = vpop.eup %2866 }
 0x1ae   : > { %v1878_v54 = vadd.f32 %v2853_v30, %v1877_v24  ;;  %2613 = vmatpush3.bf16.msra.mxu1 %v1897_v48  ;;  %v1901_v45 = vpack.c.bf16 %v2867_v29, %v2865_v56  ;;  %v2869_v59 = vpop.eup %2868  ;;  %v1598_v48 = vmul.f32 0.0, %v1596_v8 }
 0x1af   : > { %2614 = vmatprep.subr.bf16.mxu1 %v3918_v40  ;;  %v1870_v61 = vmul.f32 %v2869_v59, %v1869_v63  ;;  %v1948_v21 = vrot.slane %v2869_v59, %v3317_v57 }
 0x1b0   : > { %v1879_v33 = vadd.f32 %v2855_v9, %v1878_v54 }
 0x1b1   : > { %v2871_v15 = vpop.eup %2870 }
 0x1b2   : > { %v1880_v42 = vadd.f32 %v2857_v4, %v1879_v33  ;;  %2615 = vmatpush3.bf16.msra.mxu1 %v1898_v0  ;;  %v2873_v60 = vpop.eup %2872  ;;  %v1976_v46 = vrot.slane %v2871_v15, %v3317_v57 }
 0x1b3   : > { %2616 = vmatprep.subr.bf16.mxu1 %v3918_v40  ;;  %v1980_v62 = vrot.slane %v2873_v60, %v3317_v57 }
 0x1b4   : > { %v1881_v5 = vadd.f32 %v2859_v19, %v1880_v42  ;;  %v1959_v19 = vld [vmem:[#allocation3 + $0x2] sm:$0x1] }
 0x1b5   : > { %2874 = vrcp.f32 %v1959_v19 }
 0x1b6   : > { %v1882_v35 = vadd.f32 %v2861_v1, %v1881_v5  ;;  %2617 = vmatpush3.bf16.msra.mxu1 %v1899_v23  ;;  %v2733_v5 = vld [vmem:[%s3895_s5] sm:$0xff]  }
 0x1b7   : > { %2618 = vmatprep.subr.bf16.mxu1 %v3918_v40 }
 0x1b8   : > { %v1883_v10 = vadd.f32 %v2863_v17, %v1882_v35 }
 0x1ba   : > { %v1884_v6 = vadd.f32 %v2865_v56, %v1883_v10  ;;  %2619 = vmatpush3.bf16.msra.mxu1 %v1900_v36  ;;  %v1950_v56 = vmul.f32 0.0, %v1948_v21 }
 0x1bb   : > { %2620 = vmatprep.subr.bf16.mxu1 %v3918_v40 }
 0x1bc   : > { %v1885_v2 = vadd.f32 %v2867_v29, %v1884_v6 }
 0x1be   : > { %v1886_v37 = vrot.slane %v1885_v2, 4  ;;  %2621 = vmatpush3.bf16.msra.mxu1 %v1901_v45 }
 0x1bf   : > { %v2875_v23 = vpop.eup %2874 }
 0x1c0   : > { %v1887_v20 = vadd.f32 %v1886_v37, %v1885_v2  ;;  %v1984_v39 = vrot.slane %v2875_v23, %v3317_v57  ;;  %v2013_v2 = vpop.permute.xlu1 %2012 }
 0x1c1   : > { %2623 = vmatmul.mubr.bf16.vlgmr.msra.gmra.mrb[12].mxu1 %v2365_v47 }
 0x1c2   : > { %v1888_v13 = vrot.slane %v1887_v20, 2 }
 0x1c4   : > { %v1889_v22 = vadd.f32 %v1888_v13, %v1887_v20 }
 0x1c6   : > { %v1890_v43 = vrot.slane %v1889_v22, 1 }
 0x1c8   : > { %v1891_v49 = vadd.f32 %v1890_v43, %v1889_v22 }
 0x1ca   : > { %v1892_v7 = vadd.f32 %v1891_v49, %v1870_v61 }
 0x1cc   : > { %1893 = vst [vmem:[#allocation3 + $0x3] sm:$0x1] %v1892_v7 }
 0x1d3   : > { %v1960_v1 = vld [vmem:[#allocation3 + $0x3] sm:$0x1] }
 0x1d4   : > { %2876 = vrcp.f32 %v1960_v1 }
 0x1de   : > { %v2877_v17 = vpop.eup %2876 }
 0x1df   : > { %v1988_v36 = vrot.slane %v2877_v17, %v3317_v57  ;;  %v2008_v57 = vpop.permute.xlu0 %2007 }
 0x231   : > { %v881_v26 = vpop.f32.mrb[0].mxu1 }
 0x232   : > { %v895_v14 = vadd.f32 %v894_v38, %v881_v26  ;;  %v2510_v3 = vpop.f32.mrb[1].mxu1 }
 0x233   : > { %v884_v11 = vpop.f32.mrb[2].mxu1 }
 0x234   : > { %v2511_v44 = vpop.f32.mrb[3].mxu1  ;;  %v1993_v58 = vmul.f32 %v1976_v46, %v895_v14 }
 0x251   : > { %v1232_v52 = vpop.f32.mrb[4].mxu1 }
 0x252   : > { %v1247_v28 = vadd.f32 %v1246_v16, %v1232_v52  ;;  %v2548_v18 = vpop.f32.mrb[5].mxu1 }
 0x253   : > { %v1235_v51 = vpop.f32.mrb[6].mxu1 }
 0x254   : > { %v1994_v12 = vmul.f32 %v1980_v62, %v1247_v28  ;;  %v2549_v30 = vpop.f32.mrb[7].mxu1 }
 0x256   : > { %v2396_v32 = vpack.c.bf16 %v1994_v12, %v1993_v58 }
 0x258   : > { %2627 = vmatpush3.bf16.msra.mxu0 %v2396_v32 }
 0x259   : > { %2628 = vmatprep.subr.bf16.mxu0 %v3918_v40 }
 0x272   : > { %v1584_v9 = vpop.f32.mrb[8].mxu1 }
 0x273   : > { %v1599_v53 = vadd.f32 %v1598_v48, %v1584_v9  ;;  %v2586_v4 = vpop.f32.mrb[9].mxu1 }
 0x274   : > { %v1587_v31 = vpop.f32.mrb[10].mxu1 }
 0x275   : > { %v2587_v0 = vpop.f32.mrb[11].mxu1  ;;  %v1995_v45 = vmul.f32 %v1984_v39, %v1599_v53 }
 0x294   : > { %v1936_v40 = vpop.f32.mrb[12].mxu1 }
 0x295   : > { %v1951_v24 = vadd.f32 %v1950_v56, %v1936_v40  ;;  %v2624_v29 = vpop.f32.mrb[13].mxu1 }
 0x296   : > { %v1939_v54 = vpop.f32.mrb[14].mxu1 }
 0x297   : > { %v1996_v33 = vmul.f32 %v1988_v36, %v1951_v24  ;;  %v2625_v42 = vpop.f32.mrb[15].mxu1 }
 0x299   : > { %v2397_v50 = vpack.c.bf16 %v1996_v33, %v1995_v45 }
 0x29b   : > { %2629 = vmatpush3.bf16.msra.mxu0 %v2397_v50 }
 0x29e   : > { %2631 = vmatmul.mubr.msk.bf16.vlgmr.msra.gmra.mrb[64].mxu0 %vm2032_vm3, %v2733_v5 }
 0x371   : > { %v2070_v35 = vpop.f32.mrb[64].mxu0 }
 0x372   : > { %v2071_v10 = vadd.f32 %v2070_v35, %v2008_v57  ;;  %v2632_v6 = vpop.f32.mrb[65].mxu0 }
 0x373   : > { %v2073_v37 = vpop.f32.mrb[66].mxu0 }
 0x374   : > { %v2084_v47 = vmul.f32 %v2386_v25, %v2071_v10  ;;  %v2074_v20 = vadd.f32 %v2073_v37, %v2013_v2  ;;  %v2633_v13 = vpop.f32.mrb[67].mxu0 }
 0x376   : > { %2086 = vst [vmem:[%s394_s19] sm:$0xff] %v2084_v47  ;;  %v2085_v22 = vmul.f32 %v2386_v25, %v2074_v20 }
 0x378   : > { %2087 = vst [vmem:[%s394_s19 + $0x8] sm:$0xff] %v2085_v22 }
 0x379   : > { %2891 = shalt.err (!%p2888_p5)
}
 0x37a   : > { %s2892_s8 = scalar_lea.hbm %s3842_s23, 256  ;;  %s2896_s19 = scalar_lea.hbm %s3897_s7, 512 }
 0x37b   : > { %p2893_p6 = scmp.ne.s32.totalorder %s3842_s23, %s2892_s8  ;;  %p2897_p10 = scmp.lt.u32.totalorder %s3842_s23, %s3897_s7 }
 0x37c   : > { %p2898_p11 = scmp.lt.u32.totalorder %s2896_s19, %s2892_s8  ;;  %p2900_p13 = scmp.lt.u32.totalorder %s2892_s8, %s3842_s23 }
 0x37d   : > { %p2894_p7 = pnand %p2893_p6, %p3045_p4 }
 0x37e   : > { %p2899_p12 = por %p2898_p11, %p2897_p10 }
 0x37f   : > { %p2895_p9 = pneg %p2894_p7 }
 0x380   : > { %p2901_p0 = por %p2900_p13, %p2899_p12 }
 0x382   : > { %p2902_p1 = pnand %p2901_p0, %p2895_p9 }
 0x384   : > { %2905 = shalt.err (!%p2902_p1)
}
 0x385   : > { %s2963_s22 = smov 128   ;;  %s2964_s30 = smov 8  }
 0x386   : > { %2638 = dma.vmem_to_hbm [thread:$0]  (%p3045_p4), %s3837_s21, 256, %s3842_s23, %s3844_s17, %s2963_s22, %s2963_s22, %s2964_s30  }
 0x387 PF: > { %p2644_p2 = scmp.ge.s32.totalorder %s2956_s29, 2  ;;  %s2118_s27 = sand.u32 1, %s2936_s24  }
 0x388   : > { %s2119_s10 = scalar_lea.sflag [#allocation6], %s2118_s27 }
 0x389   : > { %p2641_p3 = pnand %p2644_p2, %p3052_p8 }
 0x38b   : > { %2931 = dma.done.wait (!%p2641_p3), %s2119_s10, 256  }
 0x38c   : > { %2933 = vsyncadd (!%p2641_p3), %s2119_s10, 4294967040  ;;  %s20_s29 = sadd.s32 1, %s2956_s29   ;;  %s3936_s24 = smov %s2940_s25 }
 0x38d   : > { %p17_p5 = scmp.ge.s32.totalorder %s20_s29, 4   ;;  %s3937_s25 = smov %s2944_s26 }
 0x38e   : > { %s3938_s26 = smov %s3058_s14  ;;  %s3939_s27 = smov %s2952_s28 }
 0x38f   : > { %s3940_s28 = smov %s3942_s9  ;;  %19 = sbr.rel (!%p17_p5) target bundleno = 4 (0x4), region = 121 }
 0x396   :  { %2124 = vsyncpa [#allocation6], 1 }
 0x397   :  { %2126 = vsyncpa [#allocation6 + $0x1], 1 }

</bundles_post_ra>
